<compile_context>
chip_gen: v5e
topology: v5e:2x2
jax: 0.10.0
libtpu: 0.0.40
codegen_flags: <defaults>
</compile_context>

<pallas_src>
import functools
import math

import jax
import jax.numpy as jnp
from jax.experimental import pallas as pl
from jax.experimental.pallas import tpu as pltpu

NEG_INF = -1e30  # stands in for -inf in additive masks (equivalent after softmax)


def _round_up(x, m):
    return (x + m - 1) // m * m


# --------------------------------------------------------------------------------------
# Tiled linear:  y = x @ w + b  (optionally relu)
# --------------------------------------------------------------------------------------

def _linear_kernel(x_ref, w_ref, b_ref, o_ref, acc_ref, *, apply_relu):
    @pl.when(pl.program_id(2) == 0)
    def _():
        acc_ref[...] = jnp.zeros_like(acc_ref)

    acc_ref[...] += jnp.dot(x_ref[...], w_ref[...], preferred_element_type=jnp.float32)

    @pl.when(pl.program_id(2) == pl.num_programs(2) - 1)
    def _():
        y = acc_ref[...] + b_ref[...]
        if apply_relu:
            y = jnp.maximum(y, 0.0)
        o_ref[...] = y


def linear_pallas(x2d, w, b, apply_relu=False):
    """x2d:[M,K]  w:[K,N]  b:[N] -> [M,N]"""
    M, K = x2d.shape
    N = w.shape[1]

    tm = min(_round_up(M, 8), 256)
    Mp = _round_up(M, tm)
    if K <= 512:
        tk, Kp = K, K
    else:
        tk, Kp = 512, _round_up(K, 512)
    tn = min(_round_up(N, 128), 512)          # lane-dense output tiles
    Np = _round_up(N, tn)

    xp = jnp.pad(x2d, ((0, Mp - M), (0, Kp - K))) if (Mp, Kp) != (M, K) else x2d
    wp = jnp.pad(w, ((0, Kp - K), (0, Np - N))) if (Kp, Np) != (K, N) else w
    bp = jnp.pad(b, (0, Np - N)) if Np != N else b

    out = pl.pallas_call(
        functools.partial(_linear_kernel, apply_relu=apply_relu),
        out_shape=jax.ShapeDtypeStruct((Mp, Np), jnp.float32),
        grid=(Mp // tm, Np // tn, Kp // tk),
        in_specs=[
            pl.BlockSpec((tm, tk), lambda i, j, k: (i, k)),
            pl.BlockSpec((tk, tn), lambda i, j, k: (k, j)),
            pl.BlockSpec((1, tn), lambda i, j, k: (0, j)),
        ],
        out_specs=pl.BlockSpec((tm, tn), lambda i, j, k: (i, j)),
        scratch_shapes=[pltpu.VMEM((tm, tn), jnp.float32)],
        compiler_params=pltpu.CompilerParams(
            dimension_semantics=("parallel", "parallel", "arbitrary")),
    )(xp, wp, bp.reshape(1, Np))
    return out[:M, :N]


# --------------------------------------------------------------------------------------
# Plain LayerNorm (tiled over rows) — used only for the encoder/decoder final norms
# --------------------------------------------------------------------------------------

def _ln_kernel(x_ref, g_ref, b_ref, o_ref, *, eps):
    x = x_ref[...]
    mean = jnp.mean(x, axis=-1, keepdims=True)
    xc = x - mean
    var = jnp.mean(xc * xc, axis=-1, keepdims=True)
    o_ref[...] = xc * jax.lax.rsqrt(var + eps) * g_ref[...] + b_ref[...]


def layernorm_pallas(x, gamma, beta, eps=1e-5):
    shape = x.shape
    D = shape[-1]
    x2 = x.reshape(-1, D)
    M = x2.shape[0]
    tm = min(_round_up(M, 8), 512)
    Mp = _round_up(M, tm)
    if Mp != M:
        x2 = jnp.pad(x2, ((0, Mp - M), (0, 0)))
    out = pl.pallas_call(
        functools.partial(_ln_kernel, eps=eps),
        out_shape=jax.ShapeDtypeStruct((Mp, D), jnp.float32),
        grid=(Mp // tm,),
        in_specs=[
            pl.BlockSpec((tm, D), lambda i: (i, 0)),
            pl.BlockSpec((1, D), lambda i: (0, 0)),
            pl.BlockSpec((1, D), lambda i: (0, 0)),
        ],
        out_specs=pl.BlockSpec((tm, D), lambda i: (i, 0)),
        compiler_params=pltpu.CompilerParams(dimension_semantics=("parallel",)),
    )(x2, gamma.reshape(1, D), beta.reshape(1, D))
    return out[:M].reshape(shape)


# --------------------------------------------------------------------------------------
# Fused: attention output projection + residual add + LayerNorm
# --------------------------------------------------------------------------------------

def _proj_add_ln_kernel(a_ref, wo_ref, bo_ref, res_ref, g_ref, b_ref, o_ref, *, eps):
    y = jnp.dot(a_ref[...], wo_ref[...], preferred_element_type=jnp.float32) + bo_ref[...]
    y = y + res_ref[...]
    mean = jnp.mean(y, axis=-1, keepdims=True)
    yc = y - mean
    var = jnp.mean(yc * yc, axis=-1, keepdims=True)
    o_ref[...] = yc * jax.lax.rsqrt(var + eps) * g_ref[...] + b_ref[...]


def proj_add_ln_pallas(a2d, wo, bo, res2d, gamma, beta, eps=1e-5):
    M, E = a2d.shape
    tm = min(_round_up(M, 8), 256)
    Mp = _round_up(M, tm)
    if Mp != M:
        a2d = jnp.pad(a2d, ((0, Mp - M), (0, 0)))
        res2d = jnp.pad(res2d, ((0, Mp - M), (0, 0)))
    out = pl.pallas_call(
        functools.partial(_proj_add_ln_kernel, eps=eps),
        out_shape=jax.ShapeDtypeStruct((Mp, E), jnp.float32),
        grid=(Mp // tm,),
        in_specs=[
            pl.BlockSpec((tm, E), lambda i: (i, 0)),
            pl.BlockSpec((E, E), lambda i: (0, 0)),
            pl.BlockSpec((1, E), lambda i: (0, 0)),
            pl.BlockSpec((tm, E), lambda i: (i, 0)),
            pl.BlockSpec((1, E), lambda i: (0, 0)),
            pl.BlockSpec((1, E), lambda i: (0, 0)),
        ],
        out_specs=pl.BlockSpec((tm, E), lambda i: (i, 0)),
        compiler_params=pltpu.CompilerParams(dimension_semantics=("parallel",)),
    )(a2d, wo, bo.reshape(1, E), res2d, gamma.reshape(1, E), beta.reshape(1, E))
    return out[:M]


# --------------------------------------------------------------------------------------
# Fused FFN block: LN( x + relu(x@w1+b1) @ w2 + b2 )   (F-tiled accumulator grid axis)
# --------------------------------------------------------------------------------------

def _ffn_add_ln_kernel(x_ref, w1_ref, b1_ref, w2_ref, b2_ref, g_ref, beta_ref,
                       o_ref, acc_ref, *, eps):
    @pl.when(pl.program_id(1) == 0)
    def _():
        acc_ref[...] = jnp.zeros_like(acc_ref)

    h = jnp.dot(x_ref[...], w1_ref[...], preferred_element_type=jnp.float32) + b1_ref[...]
    h = jnp.maximum(h, 0.0)
    acc_ref[...] += jnp.dot(h, w2_ref[...], preferred_element_type=jnp.float32)

    @pl.when(pl.program_id(1) == pl.num_programs(1) - 1)
    def _():
        y = x_ref[...] + acc_ref[...] + b2_ref[...]        # residual = FFN input
        mean = jnp.mean(y, axis=-1, keepdims=True)
        yc = y - mean
        var = jnp.mean(yc * yc, axis=-1, keepdims=True)
        o_ref[...] = yc * jax.lax.rsqrt(var + eps) * g_ref[...] + beta_ref[...]


def ffn_add_ln_pallas(x2d, w1, b1, w2, b2, gamma, beta, eps=1e-5):
    M, E = x2d.shape
    F = w1.shape[1]
    tm = min(_round_up(M, 8), 256)
    Mp = _round_up(M, tm)
    if F <= 512:
        tf, Fp = F, F
    else:
        tf, Fp = 512, _round_up(F, 512)

    xp = jnp.pad(x2d, ((0, Mp - M), (0, 0))) if Mp != M else x2d
    w1p = jnp.pad(w1, ((0, 0), (0, Fp - F))) if Fp != F else w1
    b1p = jnp.pad(b1, (0, Fp - F)) if Fp != F else b1
    w2p = jnp.pad(w2, ((0, Fp - F), (0, 0))) if Fp != F else w2

    out = pl.pallas_call(
        functools.partial(_ffn_add_ln_kernel, eps=eps),
        out_shape=jax.ShapeDtypeStruct((Mp, E), jnp.float32),
        grid=(Mp // tm, Fp // tf),
        in_specs=[
            pl.BlockSpec((tm, E), lambda i, j: (i, 0)),
            pl.BlockSpec((E, tf), lambda i, j: (0, j)),
            pl.BlockSpec((1, tf), lambda i, j: (0, j)),
            pl.BlockSpec((tf, E), lambda i, j: (j, 0)),
            pl.BlockSpec((1, E), lambda i, j: (0, 0)),
            pl.BlockSpec((1, E), lambda i, j: (0, 0)),
            pl.BlockSpec((1, E), lambda i, j: (0, 0)),
        ],
        out_specs=pl.BlockSpec((tm, E), lambda i, j: (i, 0)),
        scratch_shapes=[pltpu.VMEM((tm, E), jnp.float32)],
        compiler_params=pltpu.CompilerParams(
            dimension_semantics=("parallel", "arbitrary")),
    )(xp, w1p, b1p.reshape(1, Fp), w2p, b2.reshape(1, E),
      gamma.reshape(1, E), beta.reshape(1, E))
    return out[:M]


# --------------------------------------------------------------------------------------
# Attention: all heads of one batch element per grid step, [B,S,E] layout (no transposes),
# per-batch additive mask (no head broadcast).
# --------------------------------------------------------------------------------------

def _softmax_av(s, vh):
    m = jnp.max(s, axis=-1, keepdims=True)
    p = jnp.exp(s - m)
    denom = jnp.sum(p, axis=-1, keepdims=True)
    return jnp.dot(p, vh, preferred_element_type=jnp.float32) * pl.reciprocal(denom, approx=True)


def _self_attn_kernel(qkv_ref, bias_ref, o_ref, *, num_heads, head_dim, scale):
    E = num_heads * head_dim
    qkv = qkv_ref[0]          # (S, 3E)
    bias = bias_ref[0]        # (S, S) additive mask, shared by all heads
    for h in range(num_heads):
        lo, hi = h * head_dim, (h + 1) * head_dim
        qh = qkv[:, lo:hi]
        kh = qkv[:, E + lo:E + hi]
        vh = qkv[:, 2 * E + lo:2 * E + hi]
        s = jnp.dot(qh, kh.T, preferred_element_type=jnp.float32) * scale + bias
        o_ref[0, :, lo:hi] = _softmax_av(s, vh)


def _cross_attn_kernel(q_ref, kv_ref, o_ref, *, num_heads, head_dim, scale):
    E = num_heads * head_dim
    q = q_ref[0]              # (Sq, E)
    kv = kv_ref[0]            # (Sk, 2E)
    for h in range(num_heads):
        lo, hi = h * head_dim, (h + 1) * head_dim
        qh = q[:, lo:hi]
        kh = kv[:, lo:hi]
        vh = kv[:, E + lo:E + hi]
        s = jnp.dot(qh, kh.T, preferred_element_type=jnp.float32) * scale
        o_ref[0, :, lo:hi] = _softmax_av(s, vh)


def self_attention_pallas(qkv, bias, num_heads):
    """qkv:[B,S,3E]  bias:[B,S,S] (additive)  ->  [B,S,E]"""
    B, S, threeE = qkv.shape
    E = threeE // 3
    Dh = E // num_heads
    return pl.pallas_call(
        functools.partial(_self_attn_kernel, num_heads=num_heads, head_dim=Dh,
                          scale=1.0 / math.sqrt(Dh)),
        out_shape=jax.ShapeDtypeStruct((B, S, E), jnp.float32),
        grid=(B,),
        in_specs=[
            pl.BlockSpec((1, S, threeE), lambda b: (b, 0, 0)),
            pl.BlockSpec((1, S, S), lambda b: (b, 0, 0)),
        ],
        out_specs=pl.BlockSpec((1, S, E), lambda b: (b, 0, 0)),
        compiler_params=pltpu.CompilerParams(dimension_semantics=("parallel",)),
    )(qkv, bias)


def cross_attention_pallas(q, kv, num_heads):
    """q:[B,Sq,E]  kv:[B,Sk,2E]  ->  [B,Sq,E]  (no mask: memory_key_padding_mask is None)"""
    B, Sq, E = q.shape
    Sk = kv.shape[1]
    Dh = E // num_heads
    return pl.pallas_call(
        functools.partial(_cross_attn_kernel, num_heads=num_heads, head_dim=Dh,
                          scale=1.0 / math.sqrt(Dh)),
        out_shape=jax.ShapeDtypeStruct((B, Sq, E), jnp.float32),
        grid=(B,),
        in_specs=[
            pl.BlockSpec((1, Sq, E), lambda b: (b, 0, 0)),
            pl.BlockSpec((1, Sk, 2 * E), lambda b: (b, 0, 0)),
        ],
        out_specs=pl.BlockSpec((1, Sq, E), lambda b: (b, 0, 0)),
        compiler_params=pltpu.CompilerParams(dimension_semantics=("parallel",)),
    )(q, kv)


# --------------------------------------------------------------------------------------
# Model (thin JAX glue around the fused kernels)
# --------------------------------------------------------------------------------------

def encoder_layer(x, p, src_bias, num_heads):
    B, S, E = x.shape
    x2 = x.reshape(B * S, E)
    qkv = linear_pallas(x2, p["sa_w_qkv"], p["sa_b_qkv"]).reshape(B, S, 3 * E)
    a = self_attention_pallas(qkv, src_bias, num_heads)
    x2 = proj_add_ln_pallas(a.reshape(B * S, E), p["sa_wo"], p["sa_bo"], x2,
                            p["norm1_g"], p["norm1_b"])
    x2 = ffn_add_ln_pallas(x2, p["w1"], p["b1"], p["w2"], p["b2"],
                           p["norm2_g"], p["norm2_b"])
    return x2.reshape(B, S, E)


def decoder_layer(x, memory, p, tgt_bias, num_heads):
    B, St, E = x.shape
    Sm = memory.shape[1]
    x2 = x.reshape(B * St, E)
    # masked self-attention
    qkv = linear_pallas(x2, p["sa_w_qkv"], p["sa_b_qkv"]).reshape(B, St, 3 * E)
    a = self_attention_pallas(qkv, tgt_bias, num_heads)
    x2 = proj_add_ln_pallas(a.reshape(B * St, E), p["sa_wo"], p["sa_bo"], x2,
                            p["norm1_g"], p["norm1_b"])
    # cross-attention (memory_key_padding_mask is None in the PyTorch forward)
    q = linear_pallas(x2, p["ca_wq"], p["ca_bq"]).reshape(B, St, E)
    kv = linear_pallas(memory.reshape(B * Sm, E), p["ca_w_kv"], p["ca_b_kv"]).reshape(B, Sm, 2 * E)
    c = cross_attention_pallas(q, kv, num_heads)
    x2 = proj_add_ln_pallas(c.reshape(B * St, E), p["ca_wo"], p["ca_bo"], x2,
                            p["norm2_g"], p["norm2_b"])
    # feed-forward
    x2 = ffn_add_ln_pallas(x2, p["w1"], p["b1"], p["w2"], p["b2"],
                           p["norm3_g"], p["norm3_b"])
    return x2.reshape(B, St, E)


def transformer_forward(params, src_ids, tgt_ids, cfg):
    B, Ss = src_ids.shape
    _, St = tgt_ids.shape
    E, H = cfg["embedding_size"], cfg["num_heads"]
    pad = cfg["pad_index"]

    # TODO(synk): embedding gather (jnp.take) stays in plain JAX glue; no clean tiny-scale Pallas gather.
    src_emb = jnp.take(params["src_word_emb"], src_ids, axis=0) + params["pos_emb_src"][:Ss][None, :, :]
    tgt_emb = jnp.take(params["tgt_word_emb"], tgt_ids, axis=0) + params["pos_emb_tgt"][:St][None, :, :]
    # dropout p=0.0 -> identity

    # per-batch additive mask biases (0 = attend, NEG_INF = masked); heads share them.
    src_pad = (src_ids == pad)                                        # [B, Ss]
    tgt_pad = (tgt_ids == pad)                                        # [B, St]
    src_bias = jnp.broadcast_to(
        jnp.where(src_pad[:, None, :], NEG_INF, 0.0).astype(jnp.float32), (B, Ss, Ss))
    causal = jnp.triu(jnp.ones((St, St), bool), k=1)
    tgt_bias = jnp.where(causal[None, :, :] | tgt_pad[:, None, :], NEG_INF, 0.0).astype(jnp.float32)
    # Note: a fully-masked key row yields a uniform softmax here (NEG_INF, not -inf) rather than
    # PyTorch's NaN; harmless since such query positions are padded/discarded.

    # encoder
    x = src_emb.astype(jnp.float32)
    for lp in params["encoder_layers"]:
        x = encoder_layer(x, lp, src_bias, H)
    memory = layernorm_pallas(x, params["enc_norm_g"], params["enc_norm_b"])

    # decoder
    y = tgt_emb.astype(jnp.float32)
    for lp in params["decoder_layers"]:
        y = decoder_layer(y, memory, lp, tgt_bias, H)
    y = layernorm_pallas(y, params["dec_norm_g"], params["dec_norm_b"])

    # final projection to the target vocabulary
    out = linear_pallas(y.reshape(B * St, E), params["fc_w"], params["fc_b"])
    return out.reshape(B, St, cfg["target_vocab_size"])


# --------------------------------------------------------------------------------------
# Deterministic parameter init (shapes follow the PyTorch module's __init__; QKV / KV packed)
# --------------------------------------------------------------------------------------

def init_params(seed, cfg):
    E = cfg["embedding_size"]
    F = cfg["dim_feedforward"]
    keys = iter(jax.random.split(jax.random.PRNGKey(seed), 512))

    def nrm(shape, scale=0.02):
        return scale * jax.random.normal(next(keys), shape, dtype=jnp.float32)

    def self_attn_params():
        return dict(sa_w_qkv=nrm((E, 3 * E)), sa_b_qkv=nrm((3 * E,)),
                    sa_wo=nrm((E, E)), sa_bo=nrm((E,)))

    def cross_attn_params():
        return dict(ca_wq=nrm((E, E)), ca_bq=nrm((E,)),
                    ca_w_kv=nrm((E, 2 * E)), ca_b_kv=nrm((2 * E,)),
                    ca_wo=nrm((E, E)), ca_bo=nrm((E,)))

    def ffn_params():
        return dict(w1=nrm((E, F)), b1=nrm((F,)), w2=nrm((F, E)), b2=nrm((E,)))

    def enc_layer():
        d = dict(**self_attn_params(), **ffn_params())
        d.update(norm1_g=jnp.ones((E,), jnp.float32), norm1_b=jnp.zeros((E,), jnp.float32),
                 norm2_g=jnp.ones((E,), jnp.float32), norm2_b=jnp.zeros((E,), jnp.float32))
        return d

    def dec_layer():
        d = dict(**self_attn_params(), **cross_attn_params(), **ffn_params())
        d.update(norm1_g=jnp.ones((E,), jnp.float32), norm1_b=jnp.zeros((E,), jnp.float32),
                 norm2_g=jnp.ones((E,), jnp.float32), norm2_b=jnp.zeros((E,), jnp.float32),
                 norm3_g=jnp.ones((E,), jnp.float32), norm3_b=jnp.zeros((E,), jnp.float32))
        return d

    return dict(
        src_word_emb=nrm((cfg["source_vocab_size"], E)),
        tgt_word_emb=nrm((cfg["target_vocab_size"], E)),
        pos_emb_src=nrm((cfg["max_len"], E)),
        pos_emb_tgt=nrm((cfg["max_len"], E)),
        encoder_layers=[enc_layer() for _ in range(cfg["num_encoder_layers"])],
        decoder_layers=[dec_layer() for _ in range(cfg["num_decoder_layers"])],
        enc_norm_g=jnp.ones((E,), jnp.float32), enc_norm_b=jnp.zeros((E,), jnp.float32),
        dec_norm_g=jnp.ones((E,), jnp.float32), dec_norm_b=jnp.zeros((E,), jnp.float32),
        fc_w=nrm((E, cfg["target_vocab_size"])), fc_b=nrm((cfg["target_vocab_size"],)),
    )


# --------------------------------------------------------------------------------------
# Main
# --------------------------------------------------------------------------------------

if __name__ == "__main__":
    cfg = dict(
        source_vocab_size=50,
        target_vocab_size=60,
        embedding_size=32,
        num_heads=4,
        num_encoder_layers=2,
        num_decoder_layers=2,
        dim_feedforward=2048,   # nn.Transformer default
        dropout=0.0,            # eval semantics / identity dropout
        pad_index=0,
        max_len=16,
    )
    B, Ss, St = 2, 8, 8

    key = jax.random.PRNGKey(0)
    k_src, k_tgt = jax.random.split(key)
    src = jax.random.randint(k_src, (B, Ss), 1, cfg["source_vocab_size"], dtype=jnp.int32)
    tgt = jax.random.randint(k_tgt, (B, St), 1, cfg["target_vocab_size"], dtype=jnp.int32)
    # force some padding tokens to exercise key-padding masks
    src = src.at[:, -1].set(cfg["pad_index"])
    tgt = tgt.at[:, -1].set(cfg["pad_index"])

    params = init_params(0, cfg)

    fwd = jax.jit(lambda p, s, t: transformer_forward(p, s, t, cfg))
    out = fwd(params, src, tgt)
    out = jax.block_until_ready(out)

    assert out.shape == (B, St, cfg["target_vocab_size"]), out.shape
    assert bool(jnp.all(jnp.isfinite(out)))
    print("KERNEL_OK")
</pallas_src>

<mosaic_0001>
module attributes {stable_mosaic.version = 11 : i64} {
  func.func @_proj_add_ln_kernel(%arg0: i32, %arg1: memref<16x32xf32, #tpu.memory_space<vmem>>, %arg2: memref<32x32xf32, #tpu.memory_space<vmem>>, %arg3: memref<1x32xf32, #tpu.memory_space<vmem>>, %arg4: memref<16x32xf32, #tpu.memory_space<vmem>>, %arg5: memref<1x32xf32, #tpu.memory_space<vmem>>, %arg6: memref<1x32xf32, #tpu.memory_space<vmem>>, %arg7: memref<16x32xf32, #tpu.memory_space<vmem>>) attributes {dimension_semantics = [#tpu.dimension_semantics<parallel>], iteration_bounds = array<i64: 1>, scalar_prefetch = 0 : i64, scratch_operands = 0 : i64, tpu.core_type = #tpu.core_type<tc>, window_params = [{transform_indices = @transform_0, window_bounds = array<i64: 16, 32>}, {pipeline_mode = #tpu.pipeline_mode<synchronous>, transform_indices = @transform_1, window_bounds = array<i64: 32, 32>}, {pipeline_mode = #tpu.pipeline_mode<synchronous>, transform_indices = @transform_2, window_bounds = array<i64: 1, 32>}, {transform_indices = @transform_3, window_bounds = array<i64: 16, 32>}, {pipeline_mode = #tpu.pipeline_mode<synchronous>, transform_indices = @transform_4, window_bounds = array<i64: 1, 32>}, {pipeline_mode = #tpu.pipeline_mode<synchronous>, transform_indices = @transform_5, window_bounds = array<i64: 1, 32>}, {transform_indices = @transform_6, window_bounds = array<i64: 16, 32>}]} {
    %c0 = arith.constant 0 : index
    %c0_0 = arith.constant 0 : index
    %0 = vector.load %arg1[%c0, %c0_0] : memref<16x32xf32, #tpu.memory_space<vmem>>, vector<16x32xf32>
    %c0_1 = arith.constant 0 : index
    %c0_2 = arith.constant 0 : index
    %1 = vector.load %arg2[%c0_1, %c0_2] : memref<32x32xf32, #tpu.memory_space<vmem>>, vector<32x32xf32>
    %cst = arith.constant dense<0.000000e+00> : vector<16x32xf32>
    %2 = tpu.matmul %0, %1, %cst {dimension_numbers = #tpu.dot_dimension_numbers<[1], [0], [0], [1], [0, 0, 1, 1], [], []>} : vector<16x32xf32>, vector<32x32xf32>, vector<16x32xf32> -> vector<16x32xf32>
    %c0_3 = arith.constant 0 : index
    %c0_4 = arith.constant 0 : index
    %3 = vector.load %arg3[%c0_3, %c0_4] : memref<1x32xf32, #tpu.memory_space<vmem>>, vector<1x32xf32>
    %4 = vector.broadcast %3 : vector<1x32xf32> to vector<16x32xf32>
    %5 = arith.addf %2, %4 : vector<16x32xf32>
    %c0_5 = arith.constant 0 : index
    %c0_6 = arith.constant 0 : index
    %6 = vector.load %arg4[%c0_5, %c0_6] : memref<16x32xf32, #tpu.memory_space<vmem>>, vector<16x32xf32>
    %7 = arith.addf %5, %6 : vector<16x32xf32>
    %cst_7 = arith.constant dense<0.000000e+00> : vector<16xf32>
    %8 = vector.multi_reduction <add>, %7, %cst_7 [1] : vector<16x32xf32> to vector<16xf32>
    %9 = vector.shape_cast %8 : vector<16xf32> to vector<16x1xf32>
    %cst_8 = arith.constant 3.200000e+01 : f32
    %10 = vector.broadcast %cst_8 : f32 to vector<16x1xf32>
    %11 = arith.divf %9, %10 : vector<16x1xf32>
    %12 = vector.broadcast %11 : vector<16x1xf32> to vector<16x32xf32>
    %13 = arith.subf %7, %12 : vector<16x32xf32>
    %14 = arith.mulf %13, %13 : vector<16x32xf32>
    %cst_9 = arith.constant dense<0.000000e+00> : vector<16xf32>
    %15 = vector.multi_reduction <add>, %14, %cst_9 [1] : vector<16x32xf32> to vector<16xf32>
    %16 = vector.shape_cast %15 : vector<16xf32> to vector<16x1xf32>
    %cst_10 = arith.constant 3.200000e+01 : f32
    %17 = vector.broadcast %cst_10 : f32 to vector<16x1xf32>
    %18 = arith.divf %16, %17 : vector<16x1xf32>
    %cst_11 = arith.constant 9.99999974E-6 : f32
    %19 = vector.broadcast %cst_11 : f32 to vector<16x1xf32>
    %20 = arith.addf %18, %19 : vector<16x1xf32>
    %21 = math.rsqrt %20 : vector<16x1xf32>
    %22 = vector.broadcast %21 : vector<16x1xf32> to vector<16x32xf32>
    %23 = arith.mulf %13, %22 : vector<16x32xf32>
    %c0_12 = arith.constant 0 : index
    %c0_13 = arith.constant 0 : index
    %24 = vector.load %arg5[%c0_12, %c0_13] : memref<1x32xf32, #tpu.memory_space<vmem>>, vector<1x32xf32>
    %25 = vector.broadcast %24 : vector<1x32xf32> to vector<16x32xf32>
    %26 = arith.mulf %23, %25 : vector<16x32xf32>
    %c0_14 = arith.constant 0 : index
    %c0_15 = arith.constant 0 : index
    %27 = vector.load %arg6[%c0_14, %c0_15] : memref<1x32xf32, #tpu.memory_space<vmem>>, vector<1x32xf32>
    %28 = vector.broadcast %27 : vector<1x32xf32> to vector<16x32xf32>
    %29 = arith.addf %26, %28 : vector<16x32xf32>
    %c0_16 = arith.constant 0 : index
    %c0_17 = arith.constant 0 : index
    %30 = vector.load %arg7[%c0_16, %c0_17] : memref<16x32xf32, #tpu.memory_space<vmem>>, vector<16x32xf32>
    tpu.vector_store %arg7[%c0_16, %c0_17], %29 {strides = array<i32>} : memref<16x32xf32, #tpu.memory_space<vmem>>, vector<16x32xf32>,
    return
  }
  func.func @transform_0(%arg0: i32) -> (i32, i32) {
    %c0_i32 = arith.constant 0 : i32
    %c0_i32_0 = arith.constant 0 : i32
    return %arg0, %c0_i32 : i32, i32
  }
  func.func @transform_1(%arg0: i32) -> (i32, i32) {
    %c0_i32 = arith.constant 0 : i32
    %c0_i32_0 = arith.constant 0 : i32
    %c0_i32_1 = arith.constant 0 : i32
    return %c0_i32, %c0_i32_0 : i32, i32
  }
  func.func @transform_2(%arg0: i32) -> (i32, i32) {
    %c0_i32 = arith.constant 0 : i32
    %c0_i32_0 = arith.constant 0 : i32
    %c0_i32_1 = arith.constant 0 : i32
    return %c0_i32, %c0_i32_0 : i32, i32
  }
  func.func @transform_3(%arg0: i32) -> (i32, i32) {
    %c0_i32 = arith.constant 0 : i32
    %c0_i32_0 = arith.constant 0 : i32
    return %arg0, %c0_i32 : i32, i32
  }
  func.func @transform_4(%arg0: i32) -> (i32, i32) {
    %c0_i32 = arith.constant 0 : i32
    %c0_i32_0 = arith.constant 0 : i32
    %c0_i32_1 = arith.constant 0 : i32
    return %c0_i32, %c0_i32_0 : i32, i32
  }
  func.func @transform_5(%arg0: i32) -> (i32, i32) {
    %c0_i32 = arith.constant 0 : i32
    %c0_i32_0 = arith.constant 0 : i32
    %c0_i32_1 = arith.constant 0 : i32
    return %c0_i32, %c0_i32_0 : i32, i32
  }
  func.func @transform_6(%arg0: i32) -> (i32, i32) {
    %c0_i32 = arith.constant 0 : i32
    %c0_i32_0 = arith.constant 0 : i32
    return %arg0, %c0_i32 : i32, i32
  }
}

module attributes {stable_mosaic.version = 11 : i64} {
  func.func @_self_attn_kernel(%arg0: i32, %arg1: memref<1x8x96xf32, #tpu.memory_space<vmem>>, %arg2: memref<1x8x8xf32, #tpu.memory_space<vmem>>, %arg3: memref<1x8x32xf32, #tpu.memory_space<vmem>>) attributes {dimension_semantics = [#tpu.dimension_semantics<parallel>], iteration_bounds = array<i64: 2>, scalar_prefetch = 0 : i64, scratch_operands = 0 : i64, tpu.core_type = #tpu.core_type<tc>, window_params = [{transform_indices = @transform_0, window_bounds = array<i64: 1, 8, 96>}, {transform_indices = @transform_1, window_bounds = array<i64: 1, 8, 8>}, {transform_indices = @transform_2, window_bounds = array<i64: 1, 8, 32>}]} {
    %c0 = arith.constant 0 : index
    %c0_0 = arith.constant 0 : index
    %c0_1 = arith.constant 0 : index
    %0 = vector.load %arg1[%c0, %c0_0, %c0_1] : memref<1x8x96xf32, #tpu.memory_space<vmem>>, vector<1x8x96xf32>
    %1 = vector.shape_cast %0 : vector<1x8x96xf32> to vector<8x96xf32>
    %c0_2 = arith.constant 0 : index
    %c0_3 = arith.constant 0 : index
    %c0_4 = arith.constant 0 : index
    %2 = vector.load %arg2[%c0_2, %c0_3, %c0_4] : memref<1x8x8xf32, #tpu.memory_space<vmem>>, vector<1x8x8xf32>
    %3 = vector.shape_cast %2 : vector<1x8x8xf32> to vector<8x8xf32>
    %4 = vector.extract_strided_slice %1 {offsets = [0, 0], sizes = [8, 8], strides = [1, 1]} : vector<8x96xf32> to vector<8x8xf32>
    %5 = vector.extract_strided_slice %1 {offsets = [0, 32], sizes = [8, 8], strides = [1, 1]} : vector<8x96xf32> to vector<8x8xf32>
    %6 = vector.extract_strided_slice %1 {offsets = [0, 64], sizes = [8, 8], strides = [1, 1]} : vector<8x96xf32> to vector<8x8xf32>
    %7 = tpu.transpose %5, [1, 0] : vector<8x8xf32> -> vector<8x8xf32>
    %cst = arith.constant dense<0.000000e+00> : vector<8x8xf32>
    %8 = tpu.matmul %4, %7, %cst {dimension_numbers = #tpu.dot_dimension_numbers<[1], [0], [0], [1], [0, 0, 1, 1], [], []>} : vector<8x8xf32>, vector<8x8xf32>, vector<8x8xf32> -> vector<8x8xf32>
    %cst_5 = arith.constant 0.353553385 : f32
    %9 = vector.broadcast %cst_5 : f32 to vector<8x8xf32>
    %10 = arith.mulf %8, %9 : vector<8x8xf32>
    %11 = arith.addf %10, %3 : vector<8x8xf32>
    %cst_6 = arith.constant dense<0xFF800000> : vector<8xf32>
    %12 = vector.multi_reduction <maximumf>, %11, %cst_6 [1] : vector<8x8xf32> to vector<8xf32>
    %13 = vector.shape_cast %12 : vector<8xf32> to vector<8x1xf32>
    %14 = vector.broadcast %13 : vector<8x1xf32> to vector<8x8xf32>
    %15 = arith.subf %11, %14 : vector<8x8xf32>
    %16 = math.exp %15 : vector<8x8xf32>
    %cst_7 = arith.constant dense<0.000000e+00> : vector<8xf32>
    %17 = vector.multi_reduction <add>, %16, %cst_7 [1] : vector<8x8xf32> to vector<8xf32>
    %18 = vector.shape_cast %17 : vector<8xf32> to vector<8x1xf32>
    %cst_8 = arith.constant dense<0.000000e+00> : vector<8x8xf32>
    %19 = tpu.matmul %16, %6, %cst_8 {dimension_numbers = #tpu.dot_dimension_numbers<[1], [0], [0], [1], [0, 0, 1, 1], [], []>} : vector<8x8xf32>, vector<8x8xf32>, vector<8x8xf32> -> vector<8x8xf32>
    %20 = tpu.reciprocal %18 {approx = true} : vector<8x1xf32> -> vector<8x1xf32>
    %21 = vector.broadcast %20 : vector<8x1xf32> to vector<8x8xf32>
    %22 = arith.mulf %19, %21 : vector<8x8xf32>
    %c0_9 = arith.constant 0 : index
    %c0_10 = arith.constant 0 : index
    %c0_11 = arith.constant 0 : index
    %23 = vector.load %arg3[%c0_9, %c0_10, %c0_11] : memref<1x8x32xf32, #tpu.memory_space<vmem>>, vector<1x8x8xf32>
    %24 = vector.shape_cast %23 : vector<1x8x8xf32> to vector<8x8xf32>
    %25 = vector.shape_cast %22 : vector<8x8xf32> to vector<1x8x8xf32>
    tpu.vector_store %arg3[%c0_9, %c0_10, %c0_11], %25 {strides = array<i32>} : memref<1x8x32xf32, #tpu.memory_space<vmem>>, vector<1x8x8xf32>,
    %26 = vector.extract_strided_slice %1 {offsets = [0, 8], sizes = [8, 8], strides = [1, 1]} : vector<8x96xf32> to vector<8x8xf32>
    %27 = vector.extract_strided_slice %1 {offsets = [0, 40], sizes = [8, 8], strides = [1, 1]} : vector<8x96xf32> to vector<8x8xf32>
    %28 = vector.extract_strided_slice %1 {offsets = [0, 72], sizes = [8, 8], strides = [1, 1]} : vector<8x96xf32> to vector<8x8xf32>
    %29 = tpu.transpose %27, [1, 0] : vector<8x8xf32> -> vector<8x8xf32>
    %cst_12 = arith.constant dense<0.000000e+00> : vector<8x8xf32>
    %30 = tpu.matmul %26, %29, %cst_12 {dimension_numbers = #tpu.dot_dimension_numbers<[1], [0], [0], [1], [0, 0, 1, 1], [], []>} : vector<8x8xf32>, vector<8x8xf32>, vector<8x8xf32> -> vector<8x8xf32>
    %cst_13 = arith.constant 0.353553385 : f32
    %31 = vector.broadcast %cst_13 : f32 to vector<8x8xf32>
    %32 = arith.mulf %30, %31 : vector<8x8xf32>
    %33 = arith.addf %32, %3 : vector<8x8xf32>
    %cst_14 = arith.constant dense<0xFF800000> : vector<8xf32>
    %34 = vector.multi_reduction <maximumf>, %33, %cst_14 [1] : vector<8x8xf32> to vector<8xf32>
    %35 = vector.shape_cast %34 : vector<8xf32> to vector<8x1xf32>
    %36 = vector.broadcast %35 : vector<8x1xf32> to vector<8x8xf32>
    %37 = arith.subf %33, %36 : vector<8x8xf32>
    %38 = math.exp %37 : vector<8x8xf32>
    %cst_15 = arith.constant dense<0.000000e+00> : vector<8xf32>
    %39 = vector.multi_reduction <add>, %38, %cst_15 [1] : vector<8x8xf32> to vector<8xf32>
    %40 = vector.shape_cast %39 : vector<8xf32> to vector<8x1xf32>
    %cst_16 = arith.constant dense<0.000000e+00> : vector<8x8xf32>
    %41 = tpu.matmul %38, %28, %cst_16 {dimension_numbers = #tpu.dot_dimension_numbers<[1], [0], [0], [1], [0, 0, 1, 1], [], []>} : vector<8x8xf32>, vector<8x8xf32>, vector<8x8xf32> -> vector<8x8xf32>
    %42 = tpu.reciprocal %40 {approx = true} : vector<8x1xf32> -> vector<8x1xf32>
    %43 = vector.broadcast %42 : vector<8x1xf32> to vector<8x8xf32>
    %44 = arith.mulf %41, %43 : vector<8x8xf32>
    %c0_17 = arith.constant 0 : index
    %c0_18 = arith.constant 0 : index
    %c8 = arith.constant 8 : index
    %45 = vector.load %arg3[%c0_17, %c0_18, %c8] : memref<1x8x32xf32, #tpu.memory_space<vmem>>, vector<1x8x8xf32>
    %46 = vector.shape_cast %45 : vector<1x8x8xf32> to vector<8x8xf32>
    %47 = vector.shape_cast %44 : vector<8x8xf32> to vector<1x8x8xf32>
    tpu.vector_store %arg3[%c0_17, %c0_18, %c8], %47 {strides = array<i32>} : memref<1x8x32xf32, #tpu.memory_space<vmem>>, vector<1x8x8xf32>,
    %48 = vector.extract_strided_slice %1 {offsets = [0, 16], sizes = [8, 8], strides = [1, 1]} : vector<8x96xf32> to vector<8x8xf32>
    %49 = vector.extract_strided_slice %1 {offsets = [0, 48], sizes = [8, 8], strides = [1, 1]} : vector<8x96xf32> to vector<8x8xf32>
    %50 = vector.extract_strided_slice %1 {offsets = [0, 80], sizes = [8, 8], strides = [1, 1]} : vector<8x96xf32> to vector<8x8xf32>
    %51 = tpu.transpose %49, [1, 0] : vector<8x8xf32> -> vector<8x8xf32>
    %cst_19 = arith.constant dense<0.000000e+00> : vector<8x8xf32>
    %52 = tpu.matmul %48, %51, %cst_19 {dimension_numbers = #tpu.dot_dimension_numbers<[1], [0], [0], [1], [0, 0, 1, 1], [], []>} : vector<8x8xf32>, vector<8x8xf32>, vector<8x8xf32> -> vector<8x8xf32>
    %cst_20 = arith.constant 0.353553385 : f32
    %53 = vector.broadcast %cst_20 : f32 to vector<8x8xf32>
    %54 = arith.mulf %52, %53 : vector<8x8xf32>
    %55 = arith.addf %54, %3 : vector<8x8xf32>
    %cst_21 = arith.constant dense<0xFF800000> : vector<8xf32>
    %56 = vector.multi_reduction <maximumf>, %55, %cst_21 [1] : vector<8x8xf32> to vector<8xf32>
    %57 = vector.shape_cast %56 : vector<8xf32> to vector<8x1xf32>
    %58 = vector.broadcast %57 : vector<8x1xf32> to vector<8x8xf32>
    %59 = arith.subf %55, %58 : vector<8x8xf32>
    %60 = math.exp %59 : vector<8x8xf32>
    %cst_22 = arith.constant dense<0.000000e+00> : vector<8xf32>
    %61 = vector.multi_reduction <add>, %60, %cst_22 [1] : vector<8x8xf32> to vector<8xf32>
    %62 = vector.shape_cast %61 : vector<8xf32> to vector<8x1xf32>
    %cst_23 = arith.constant dense<0.000000e+00> : vector<8x8xf32>
    %63 = tpu.matmul %60, %50, %cst_23 {dimension_numbers = #tpu.dot_dimension_numbers<[1], [0], [0], [1], [0, 0, 1, 1], [], []>} : vector<8x8xf32>, vector<8x8xf32>, vector<8x8xf32> -> vector<8x8xf32>
    %64 = tpu.reciprocal %62 {approx = true} : vector<8x1xf32> -> vector<8x1xf32>
    %65 = vector.broadcast %64 : vector<8x1xf32> to vector<8x8xf32>
    %66 = arith.mulf %63, %65 : vector<8x8xf32>
    %c0_24 = arith.constant 0 : index
    %c0_25 = arith.constant 0 : index
    %c16 = arith.constant 16 : index
    %67 = vector.load %arg3[%c0_24, %c0_25, %c16] : memref<1x8x32xf32, #tpu.memory_space<vmem>>, vector<1x8x8xf32>
    %68 = vector.shape_cast %67 : vector<1x8x8xf32> to vector<8x8xf32>
    %69 = vector.shape_cast %66 : vector<8x8xf32> to vector<1x8x8xf32>
    tpu.vector_store %arg3[%c0_24, %c0_25, %c16], %69 {strides = array<i32>} : memref<1x8x32xf32, #tpu.memory_space<vmem>>, vector<1x8x8xf32>,
    %70 = vector.extract_strided_slice %1 {offsets = [0, 24], sizes = [8, 8], strides = [1, 1]} : vector<8x96xf32> to vector<8x8xf32>
    %71 = vector.extract_strided_slice %1 {offsets = [0, 56], sizes = [8, 8], strides = [1, 1]} : vector<8x96xf32> to vector<8x8xf32>
    %72 = vector.extract_strided_slice %1 {offsets = [0, 88], sizes = [8, 8], strides = [1, 1]} : vector<8x96xf32> to vector<8x8xf32>
    %73 = tpu.transpose %71, [1, 0] : vector<8x8xf32> -> vector<8x8xf32>
    %cst_26 = arith.constant dense<0.000000e+00> : vector<8x8xf32>
    %74 = tpu.matmul %70, %73, %cst_26 {dimension_numbers = #tpu.dot_dimension_numbers<[1], [0], [0], [1], [0, 0, 1, 1], [], []>} : vector<8x8xf32>, vector<8x8xf32>, vector<8x8xf32> -> vector<8x8xf32>
    %cst_27 = arith.constant 0.353553385 : f32
    %75 = vector.broadcast %cst_27 : f32 to vector<8x8xf32>
    %76 = arith.mulf %74, %75 : vector<8x8xf32>
    %77 = arith.addf %76, %3 : vector<8x8xf32>
    %cst_28 = arith.constant dense<0xFF800000> : vector<8xf32>
    %78 = vector.multi_reduction <maximumf>, %77, %cst_28 [1] : vector<8x8xf32> to vector<8xf32>
    %79 = vector.shape_cast %78 : vector<8xf32> to vector<8x1xf32>
    %80 = vector.broadcast %79 : vector<8x1xf32> to vector<8x8xf32>
    %81 = arith.subf %77, %80 : vector<8x8xf32>
    %82 = math.exp %81 : vector<8x8xf32>
    %cst_29 = arith.constant dense<0.000000e+00> : vector<8xf32>
    %83 = vector.multi_reduction <add>, %82, %cst_29 [1] : vector<8x8xf32> to vector<8xf32>
    %84 = vector.shape_cast %83 : vector<8xf32> to vector<8x1xf32>
    %cst_30 = arith.constant dense<0.000000e+00> : vector<8x8xf32>
    %85 = tpu.matmul %82, %72, %cst_30 {dimension_numbers = #tpu.dot_dimension_numbers<[1], [0], [0], [1], [0, 0, 1, 1], [], []>} : vector<8x8xf32>, vector<8x8xf32>, vector<8x8xf32> -> vector<8x8xf32>
    %86 = tpu.reciprocal %84 {approx = true} : vector<8x1xf32> -> vector<8x1xf32>
    %87 = vector.broadcast %86 : vector<8x1xf32> to vector<8x8xf32>
    %88 = arith.mulf %85, %87 : vector<8x8xf32>
    %c0_31 = arith.constant 0 : index
    %c0_32 = arith.constant 0 : index
    %c24 = arith.constant 24 : index
    %89 = vector.load %arg3[%c0_31, %c0_32, %c24] : memref<1x8x32xf32, #tpu.memory_space<vmem>>, vector<1x8x8xf32>
    %90 = vector.shape_cast %89 : vector<1x8x8xf32> to vector<8x8xf32>
    %91 = vector.shape_cast %88 : vector<8x8xf32> to vector<1x8x8xf32>
    tpu.vector_store %arg3[%c0_31, %c0_32, %c24], %91 {strides = array<i32>} : memref<1x8x32xf32, #tpu.memory_space<vmem>>, vector<1x8x8xf32>,
    return
  }
  func.func @transform_0(%arg0: i32) -> (i32, i32, i32) {
    %c0_i32 = arith.constant 0 : i32
    %c0_i32_0 = arith.constant 0 : i32
    %c0_i32_1 = arith.constant 0 : i32
    return %arg0, %c0_i32, %c0_i32_0 : i32, i32, i32
  }
  func.func @transform_1(%arg0: i32) -> (i32, i32, i32) {
    %c0_i32 = arith.constant 0 : i32
    %c0_i32_0 = arith.constant 0 : i32
    %c0_i32_1 = arith.constant 0 : i32
    return %arg0, %c0_i32, %c0_i32_0 : i32, i32, i32
  }
  func.func @transform_2(%arg0: i32) -> (i32, i32, i32) {
    %c0_i32 = arith.constant 0 : i32
    %c0_i32_0 = arith.constant 0 : i32
    %c0_i32_1 = arith.constant 0 : i32
    return %arg0, %c0_i32, %c0_i32_0 : i32, i32, i32
  }
}

module attributes {stable_mosaic.version = 11 : i64} {
  func.func @_linear_kernel(%arg0: i32, %arg1: i32, %arg2: i32, %arg3: memref<16x32xf32, #tpu.memory_space<vmem>>, %arg4: memref<32x128xf32, #tpu.memory_space<vmem>>, %arg5: memref<1x128xf32, #tpu.memory_space<vmem>>, %arg6: memref<16x128xf32, #tpu.memory_space<vmem>>, %arg7: memref<16x128xf32, #tpu.memory_space<vmem>>) attributes {dimension_semantics = [#tpu.dimension_semantics<parallel>, #tpu.dimension_semantics<parallel>, #tpu.dimension_semantics<arbitrary>], iteration_bounds = array<i64: 1, 1, 1>, scalar_prefetch = 0 : i64, scratch_operands = 1 : i64, tpu.core_type = #tpu.core_type<tc>, window_params = [{transform_indices = @transform_0, window_bounds = array<i64: 16, 32>}, {transform_indices = @transform_1, window_bounds = array<i64: 32, 128>}, {transform_indices = @transform_2, window_bounds = array<i64: 1, 128>}, {transform_indices = @transform_3, window_bounds = array<i64: 16, 128>}]} {
    %c0_i32 = arith.constant 0 : i32
    %0 = arith.cmpi eq, %arg2, %c0_i32 : i32
    %1 = arith.extui %0 : i1 to i32
    %c0_i32_0 = arith.constant 0 : i32
    %2 = arith.cmpi ne, %1, %c0_i32_0 : i32
    scf.if %2 {
      %cst_10 = arith.constant 0.000000e+00 : f32
      %12 = vector.broadcast %cst_10 : f32 to vector<16x128xf32>
      %c0_11 = arith.constant 0 : index
      %c0_12 = arith.constant 0 : index
      %13 = vector.load %arg7[%c0_11, %c0_12] : memref<16x128xf32, #tpu.memory_space<vmem>>, vector<16x128xf32>
      tpu.vector_store %arg7[%c0_11, %c0_12], %12 {strides = array<i32>} : memref<16x128xf32, #tpu.memory_space<vmem>>, vector<16x128xf32>,
    } else {
    }
    %c0 = arith.constant 0 : index
    %c0_1 = arith.constant 0 : index
    %3 = vector.load %arg7[%c0, %c0_1] : memref<16x128xf32, #tpu.memory_space<vmem>>, vector<16x128xf32>
    %c0_2 = arith.constant 0 : index
    %c0_3 = arith.constant 0 : index
    %4 = vector.load %arg3[%c0_2, %c0_3] : memref<16x32xf32, #tpu.memory_space<vmem>>, vector<16x32xf32>
    %c0_4 = arith.constant 0 : index
    %c0_5 = arith.constant 0 : index
    %5 = vector.load %arg4[%c0_4, %c0_5] : memref<32x128xf32, #tpu.memory_space<vmem>>, vector<32x128xf32>
    %cst = arith.constant dense<0.000000e+00> : vector<16x128xf32>
    %6 = tpu.matmul %4, %5, %cst {dimension_numbers = #tpu.dot_dimension_numbers<[1], [0], [0], [1], [0, 0, 1, 1], [], []>} : vector<16x32xf32>, vector<32x128xf32>, vector<16x128xf32> -> vector<16x128xf32>
    %7 = arith.addf %3, %6 : vector<16x128xf32>
    %c0_6 = arith.constant 0 : index
    %c0_7 = arith.constant 0 : index
    %8 = vector.load %arg7[%c0_6, %c0_7] : memref<16x128xf32, #tpu.memory_space<vmem>>, vector<16x128xf32>
    tpu.vector_store %arg7[%c0_6, %c0_7], %7 {strides = array<i32>} : memref<16x128xf32, #tpu.memory_space<vmem>>, vector<16x128xf32>,
    %c0_i32_8 = arith.constant 0 : i32
    %9 = arith.cmpi eq, %arg2, %c0_i32_8 : i32
    %10 = arith.extui %9 : i1 to i32
    %c0_i32_9 = arith.constant 0 : i32
    %11 = arith.cmpi ne, %10, %c0_i32_9 : i32
    scf.if %11 {
      %c0_10 = arith.constant 0 : index
      %c0_11 = arith.constant 0 : index
      %12 = vector.load %arg7[%c0_10, %c0_11] : memref<16x128xf32, #tpu.memory_space<vmem>>, vector<16x128xf32>
      %c0_12 = arith.constant 0 : index
      %c0_13 = arith.constant 0 : index
      %13 = vector.load %arg5[%c0_12, %c0_13] : memref<1x128xf32, #tpu.memory_space<vmem>>, vector<1x128xf32>
      %14 = vector.broadcast %13 : vector<1x128xf32> to vector<16x128xf32>
      %15 = arith.addf %12, %14 : vector<16x128xf32>
      %c0_14 = arith.constant 0 : index
      %c0_15 = arith.constant 0 : index
      %16 = vector.load %arg6[%c0_14, %c0_15] : memref<16x128xf32, #tpu.memory_space<vmem>>, vector<16x128xf32>
      tpu.vector_store %arg6[%c0_14, %c0_15], %15 {strides = array<i32>} : memref<16x128xf32, #tpu.memory_space<vmem>>, vector<16x128xf32>,
    } else {
    }
    return
  }
  func.func @transform_0(%arg0: i32, %arg1: i32, %arg2: i32) -> (i32, i32) {
    %c0_i32 = arith.constant 0 : i32
    return %arg0, %arg2 : i32, i32
  }
  func.func @transform_1(%arg0: i32, %arg1: i32, %arg2: i32) -> (i32, i32) {
    %c0_i32 = arith.constant 0 : i32
    return %arg2, %arg1 : i32, i32
  }
  func.func @transform_2(%arg0: i32, %arg1: i32, %arg2: i32) -> (i32, i32) {
    %c0_i32 = arith.constant 0 : i32
    %c0_i32_0 = arith.constant 0 : i32
    return %c0_i32, %arg1 : i32, i32
  }
  func.func @transform_3(%arg0: i32, %arg1: i32, %arg2: i32) -> (i32, i32) {
    %c0_i32 = arith.constant 0 : i32
    return %arg0, %arg1 : i32, i32
  }
}

module attributes {stable_mosaic.version = 11 : i64} {
  func.func @_ffn_add_ln_kernel(%arg0: i32, %arg1: i32, %arg2: memref<16x32xf32, #tpu.memory_space<vmem>>, %arg3: memref<32x512xf32, #tpu.memory_space<vmem>>, %arg4: memref<1x512xf32, #tpu.memory_space<vmem>>, %arg5: memref<512x32xf32, #tpu.memory_space<vmem>>, %arg6: memref<1x32xf32, #tpu.memory_space<vmem>>, %arg7: memref<1x32xf32, #tpu.memory_space<vmem>>, %arg8: memref<1x32xf32, #tpu.memory_space<vmem>>, %arg9: memref<16x32xf32, #tpu.memory_space<vmem>>, %arg10: memref<16x32xf32, #tpu.memory_space<vmem>>) attributes {dimension_semantics = [#tpu.dimension_semantics<parallel>, #tpu.dimension_semantics<arbitrary>], iteration_bounds = array<i64: 1, 4>, scalar_prefetch = 0 : i64, scratch_operands = 1 : i64, tpu.core_type = #tpu.core_type<tc>, window_params = [{transform_indices = @transform_0, window_bounds = array<i64: 16, 32>}, {transform_indices = @transform_1, window_bounds = array<i64: 32, 512>}, {transform_indices = @transform_2, window_bounds = array<i64: 1, 512>}, {transform_indices = @transform_3, window_bounds = array<i64: 512, 32>}, {pipeline_mode = #tpu.pipeline_mode<synchronous>, transform_indices = @transform_4, window_bounds = array<i64: 1, 32>}, {pipeline_mode = #tpu.pipeline_mode<synchronous>, transform_indices = @transform_5, window_bounds = array<i64: 1, 32>}, {pipeline_mode = #tpu.pipeline_mode<synchronous>, transform_indices = @transform_6, window_bounds = array<i64: 1, 32>}, {transform_indices = @transform_7, window_bounds = array<i64: 16, 32>}]} {
    %c0_i32 = arith.constant 0 : i32
    %0 = arith.cmpi eq, %arg1, %c0_i32 : i32
    %1 = arith.extui %0 : i1 to i32
    %c0_i32_0 = arith.constant 0 : i32
    %2 = arith.cmpi ne, %1, %c0_i32_0 : i32
    scf.if %2 {
      %cst_15 = arith.constant 0.000000e+00 : f32
      %19 = vector.broadcast %cst_15 : f32 to vector<16x32xf32>
      %c0_16 = arith.constant 0 : index
      %c0_17 = arith.constant 0 : index
      %20 = vector.load %arg10[%c0_16, %c0_17] : memref<16x32xf32, #tpu.memory_space<vmem>>, vector<16x32xf32>
      tpu.vector_store %arg10[%c0_16, %c0_17], %19 {strides = array<i32>} : memref<16x32xf32, #tpu.memory_space<vmem>>, vector<16x32xf32>,
    } else {
    }
    %c0 = arith.constant 0 : index
    %c0_1 = arith.constant 0 : index
    %3 = vector.load %arg2[%c0, %c0_1] : memref<16x32xf32, #tpu.memory_space<vmem>>, vector<16x32xf32>
    %c0_2 = arith.constant 0 : index
    %c0_3 = arith.constant 0 : index
    %4 = vector.load %arg3[%c0_2, %c0_3] : memref<32x512xf32, #tpu.memory_space<vmem>>, vector<32x512xf32>
    %cst = arith.constant dense<0.000000e+00> : vector<16x512xf32>
    %5 = tpu.matmul %3, %4, %cst {dimension_numbers = #tpu.dot_dimension_numbers<[1], [0], [0], [1], [0, 0, 1, 1], [], []>} : vector<16x32xf32>, vector<32x512xf32>, vector<16x512xf32> -> vector<16x512xf32>
    %c0_4 = arith.constant 0 : index
    %c0_5 = arith.constant 0 : index
    %6 = vector.load %arg4[%c0_4, %c0_5] : memref<1x512xf32, #tpu.memory_space<vmem>>, vector<1x512xf32>
    %7 = vector.broadcast %6 : vector<1x512xf32> to vector<16x512xf32>
    %8 = arith.addf %5, %7 : vector<16x512xf32>
    %cst_6 = arith.constant 0.000000e+00 : f32
    %9 = vector.broadcast %cst_6 : f32 to vector<16x512xf32>
    %10 = arith.maximumf %8, %9 : vector<16x512xf32>
    %c0_7 = arith.constant 0 : index
    %c0_8 = arith.constant 0 : index
    %11 = vector.load %arg10[%c0_7, %c0_8] : memref<16x32xf32, #tpu.memory_space<vmem>>, vector<16x32xf32>
    %c0_9 = arith.constant 0 : index
    %c0_10 = arith.constant 0 : index
    %12 = vector.load %arg5[%c0_9, %c0_10] : memref<512x32xf32, #tpu.memory_space<vmem>>, vector<512x32xf32>
    %cst_11 = arith.constant dense<0.000000e+00> : vector<16x32xf32>
    %13 = tpu.matmul %10, %12, %cst_11 {dimension_numbers = #tpu.dot_dimension_numbers<[1], [0], [0], [1], [0, 0, 1, 1], [], []>} : vector<16x512xf32>, vector<512x32xf32>, vector<16x32xf32> -> vector<16x32xf32>
    %14 = arith.addf %11, %13 : vector<16x32xf32>
    %c0_12 = arith.constant 0 : index
    %c0_13 = arith.constant 0 : index
    %15 = vector.load %arg10[%c0_12, %c0_13] : memref<16x32xf32, #tpu.memory_space<vmem>>, vector<16x32xf32>
    tpu.vector_store %arg10[%c0_12, %c0_13], %14 {strides = array<i32>} : memref<16x32xf32, #tpu.memory_space<vmem>>, vector<16x32xf32>,
    %c3_i32 = arith.constant 3 : i32
    %16 = arith.cmpi eq, %arg1, %c3_i32 : i32
    %17 = arith.extui %16 : i1 to i32
    %c0_i32_14 = arith.constant 0 : i32
    %18 = arith.cmpi ne, %17, %c0_i32_14 : i32
    scf.if %18 {
      %c0_15 = arith.constant 0 : index
      %c0_16 = arith.constant 0 : index
      %19 = vector.load %arg2[%c0_15, %c0_16] : memref<16x32xf32, #tpu.memory_space<vmem>>, vector<16x32xf32>
      %c0_17 = arith.constant 0 : index
      %c0_18 = arith.constant 0 : index
      %20 = vector.load %arg10[%c0_17, %c0_18] : memref<16x32xf32, #tpu.memory_space<vmem>>, vector<16x32xf32>
      %21 = arith.addf %19, %20 : vector<16x32xf32>
      %c0_19 = arith.constant 0 : index
      %c0_20 = arith.constant 0 : index
      %22 = vector.load %arg6[%c0_19, %c0_20] : memref<1x32xf32, #tpu.memory_space<vmem>>, vector<1x32xf32>
      %23 = vector.broadcast %22 : vector<1x32xf32> to vector<16x32xf32>
      %24 = arith.addf %21, %23 : vector<16x32xf32>
      %cst_21 = arith.constant dense<0.000000e+00> : vector<16xf32>
      %25 = vector.multi_reduction <add>, %24, %cst_21 [1] : vector<16x32xf32> to vector<16xf32>
      %26 = vector.shape_cast %25 : vector<16xf32> to vector<16x1xf32>
      %cst_22 = arith.constant 3.200000e+01 : f32
      %27 = vector.broadcast %cst_22 : f32 to vector<16x1xf32>
      %28 = arith.divf %26, %27 : vector<16x1xf32>
      %29 = vector.broadcast %28 : vector<16x1xf32> to vector<16x32xf32>
      %30 = arith.subf %24, %29 : vector<16x32xf32>
      %31 = arith.mulf %30, %30 : vector<16x32xf32>
      %cst_23 = arith.constant dense<0.000000e+00> : vector<16xf32>
      %32 = vector.multi_reduction <add>, %31, %cst_23 [1] : vector<16x32xf32> to vector<16xf32>
      %33 = vector.shape_cast %32 : vector<16xf32> to vector<16x1xf32>
      %cst_24 = arith.constant 3.200000e+01 : f32
      %34 = vector.broadcast %cst_24 : f32 to vector<16x1xf32>
      %35 = arith.divf %33, %34 : vector<16x1xf32>
      %cst_25 = arith.constant 9.99999974E-6 : f32
      %36 = vector.broadcast %cst_25 : f32 to vector<16x1xf32>
      %37 = arith.addf %35, %36 : vector<16x1xf32>
      %38 = math.rsqrt %37 : vector<16x1xf32>
      %39 = vector.broadcast %38 : vector<16x1xf32> to vector<16x32xf32>
      %40 = arith.mulf %30, %39 : vector<16x32xf32>
      %c0_26 = arith.constant 0 : index
      %c0_27 = arith.constant 0 : index
      %41 = vector.load %arg7[%c0_26, %c0_27] : memref<1x32xf32, #tpu.memory_space<vmem>>, vector<1x32xf32>
      %42 = vector.broadcast %41 : vector<1x32xf32> to vector<16x32xf32>
      %43 = arith.mulf %40, %42 : vector<16x32xf32>
      %c0_28 = arith.constant 0 : index
      %c0_29 = arith.constant 0 : index
      %44 = vector.load %arg8[%c0_28, %c0_29] : memref<1x32xf32, #tpu.memory_space<vmem>>, vector<1x32xf32>
      %45 = vector.broadcast %44 : vector<1x32xf32> to vector<16x32xf32>
      %46 = arith.addf %43, %45 : vector<16x32xf32>
      %c0_30 = arith.constant 0 : index
      %c0_31 = arith.constant 0 : index
      %47 = vector.load %arg9[%c0_30, %c0_31] : memref<16x32xf32, #tpu.memory_space<vmem>>, vector<16x32xf32>
      tpu.vector_store %arg9[%c0_30, %c0_31], %46 {strides = array<i32>} : memref<16x32xf32, #tpu.memory_space<vmem>>, vector<16x32xf32>,
    } else {
    }
    return
  }
  func.func @transform_0(%arg0: i32, %arg1: i32) -> (i32, i32) {
    %c0_i32 = arith.constant 0 : i32
    %c0_i32_0 = arith.constant 0 : i32
    return %arg0, %c0_i32 : i32, i32
  }
  func.func @transform_1(%arg0: i32, %arg1: i32) -> (i32, i32) {
    %c0_i32 = arith.constant 0 : i32
    %c0_i32_0 = arith.constant 0 : i32
    return %c0_i32, %arg1 : i32, i32
  }
  func.func @transform_2(%arg0: i32, %arg1: i32) -> (i32, i32) {
    %c0_i32 = arith.constant 0 : i32
    %c0_i32_0 = arith.constant 0 : i32
    return %c0_i32, %arg1 : i32, i32
  }
  func.func @transform_3(%arg0: i32, %arg1: i32) -> (i32, i32) {
    %c0_i32 = arith.constant 0 : i32
    %c0_i32_0 = arith.constant 0 : i32
    return %arg1, %c0_i32 : i32, i32
  }
  func.func @transform_4(%arg0: i32, %arg1: i32) -> (i32, i32) {
    %c0_i32 = arith.constant 0 : i32
    %c0_i32_0 = arith.constant 0 : i32
    %c0_i32_1 = arith.constant 0 : i32
    return %c0_i32, %c0_i32_0 : i32, i32
  }
  func.func @transform_5(%arg0: i32, %arg1: i32) -> (i32, i32) {
    %c0_i32 = arith.constant 0 : i32
    %c0_i32_0 = arith.constant 0 : i32
    %c0_i32_1 = arith.constant 0 : i32
    return %c0_i32, %c0_i32_0 : i32, i32
  }
  func.func @transform_6(%arg0: i32, %arg1: i32) -> (i32, i32) {
    %c0_i32 = arith.constant 0 : i32
    %c0_i32_0 = arith.constant 0 : i32
    %c0_i32_1 = arith.constant 0 : i32
    return %c0_i32, %c0_i32_0 : i32, i32
  }
  func.func @transform_7(%arg0: i32, %arg1: i32) -> (i32, i32) {
    %c0_i32 = arith.constant 0 : i32
    %c0_i32_0 = arith.constant 0 : i32
    return %arg0, %c0_i32 : i32, i32
  }
}

module attributes {stable_mosaic.version = 11 : i64} {
  func.func @_ln_kernel(%arg0: i32, %arg1: memref<16x32xf32, #tpu.memory_space<vmem>>, %arg2: memref<1x32xf32, #tpu.memory_space<vmem>>, %arg3: memref<1x32xf32, #tpu.memory_space<vmem>>, %arg4: memref<16x32xf32, #tpu.memory_space<vmem>>) attributes {dimension_semantics = [#tpu.dimension_semantics<parallel>], iteration_bounds = array<i64: 1>, scalar_prefetch = 0 : i64, scratch_operands = 0 : i64, tpu.core_type = #tpu.core_type<tc>, window_params = [{transform_indices = @transform_0, window_bounds = array<i64: 16, 32>}, {pipeline_mode = #tpu.pipeline_mode<synchronous>, transform_indices = @transform_1, window_bounds = array<i64: 1, 32>}, {pipeline_mode = #tpu.pipeline_mode<synchronous>, transform_indices = @transform_2, window_bounds = array<i64: 1, 32>}, {transform_indices = @transform_3, window_bounds = array<i64: 16, 32>}]} {
    %c0 = arith.constant 0 : index
    %c0_0 = arith.constant 0 : index
    %0 = vector.load %arg1[%c0, %c0_0] : memref<16x32xf32, #tpu.memory_space<vmem>>, vector<16x32xf32>
    %cst = arith.constant dense<0.000000e+00> : vector<16xf32>
    %1 = vector.multi_reduction <add>, %0, %cst [1] : vector<16x32xf32> to vector<16xf32>
    %2 = vector.shape_cast %1 : vector<16xf32> to vector<16x1xf32>
    %cst_1 = arith.constant 3.200000e+01 : f32
    %3 = vector.broadcast %cst_1 : f32 to vector<16x1xf32>
    %4 = arith.divf %2, %3 : vector<16x1xf32>
    %5 = vector.broadcast %4 : vector<16x1xf32> to vector<16x32xf32>
    %6 = arith.subf %0, %5 : vector<16x32xf32>
    %7 = arith.mulf %6, %6 : vector<16x32xf32>
    %cst_2 = arith.constant dense<0.000000e+00> : vector<16xf32>
    %8 = vector.multi_reduction <add>, %7, %cst_2 [1] : vector<16x32xf32> to vector<16xf32>
    %9 = vector.shape_cast %8 : vector<16xf32> to vector<16x1xf32>
    %cst_3 = arith.constant 3.200000e+01 : f32
    %10 = vector.broadcast %cst_3 : f32 to vector<16x1xf32>
    %11 = arith.divf %9, %10 : vector<16x1xf32>
    %cst_4 = arith.constant 9.99999974E-6 : f32
    %12 = vector.broadcast %cst_4 : f32 to vector<16x1xf32>
    %13 = arith.addf %11, %12 : vector<16x1xf32>
    %14 = math.rsqrt %13 : vector<16x1xf32>
    %15 = vector.broadcast %14 : vector<16x1xf32> to vector<16x32xf32>
    %16 = arith.mulf %6, %15 : vector<16x32xf32>
    %c0_5 = arith.constant 0 : index
    %c0_6 = arith.constant 0 : index
    %17 = vector.load %arg2[%c0_5, %c0_6] : memref<1x32xf32, #tpu.memory_space<vmem>>, vector<1x32xf32>
    %18 = vector.broadcast %17 : vector<1x32xf32> to vector<16x32xf32>
    %19 = arith.mulf %16, %18 : vector<16x32xf32>
    %c0_7 = arith.constant 0 : index
    %c0_8 = arith.constant 0 : index
    %20 = vector.load %arg3[%c0_7, %c0_8] : memref<1x32xf32, #tpu.memory_space<vmem>>, vector<1x32xf32>
    %21 = vector.broadcast %20 : vector<1x32xf32> to vector<16x32xf32>
    %22 = arith.addf %19, %21 : vector<16x32xf32>
    %c0_9 = arith.constant 0 : index
    %c0_10 = arith.constant 0 : index
    %23 = vector.load %arg4[%c0_9, %c0_10] : memref<16x32xf32, #tpu.memory_space<vmem>>, vector<16x32xf32>
    tpu.vector_store %arg4[%c0_9, %c0_10], %22 {strides = array<i32>} : memref<16x32xf32, #tpu.memory_space<vmem>>, vector<16x32xf32>,
    return
  }
  func.func @transform_0(%arg0: i32) -> (i32, i32) {
    %c0_i32 = arith.constant 0 : i32
    %c0_i32_0 = arith.constant 0 : i32
    return %arg0, %c0_i32 : i32, i32
  }
  func.func @transform_1(%arg0: i32) -> (i32, i32) {
    %c0_i32 = arith.constant 0 : i32
    %c0_i32_0 = arith.constant 0 : i32
    %c0_i32_1 = arith.constant 0 : i32
    return %c0_i32, %c0_i32_0 : i32, i32
  }
  func.func @transform_2(%arg0: i32) -> (i32, i32) {
    %c0_i32 = arith.constant 0 : i32
    %c0_i32_0 = arith.constant 0 : i32
    %c0_i32_1 = arith.constant 0 : i32
    return %c0_i32, %c0_i32_0 : i32, i32
  }
  func.func @transform_3(%arg0: i32) -> (i32, i32) {
    %c0_i32 = arith.constant 0 : i32
    %c0_i32_0 = arith.constant 0 : i32
    return %arg0, %c0_i32 : i32, i32
  }
}

module attributes {stable_mosaic.version = 11 : i64} {
  func.func @_cross_attn_kernel(%arg0: i32, %arg1: memref<1x8x32xf32, #tpu.memory_space<vmem>>, %arg2: memref<1x8x64xf32, #tpu.memory_space<vmem>>, %arg3: memref<1x8x32xf32, #tpu.memory_space<vmem>>) attributes {dimension_semantics = [#tpu.dimension_semantics<parallel>], iteration_bounds = array<i64: 2>, scalar_prefetch = 0 : i64, scratch_operands = 0 : i64, tpu.core_type = #tpu.core_type<tc>, window_params = [{transform_indices = @transform_0, window_bounds = array<i64: 1, 8, 32>}, {transform_indices = @transform_1, window_bounds = array<i64: 1, 8, 64>}, {transform_indices = @transform_2, window_bounds = array<i64: 1, 8, 32>}]} {
    %c0 = arith.constant 0 : index
    %c0_0 = arith.constant 0 : index
    %c0_1 = arith.constant 0 : index
    %0 = vector.load %arg1[%c0, %c0_0, %c0_1] : memref<1x8x32xf32, #tpu.memory_space<vmem>>, vector<1x8x32xf32>
    %1 = vector.shape_cast %0 : vector<1x8x32xf32> to vector<8x32xf32>
    %c0_2 = arith.constant 0 : index
    %c0_3 = arith.constant 0 : index
    %c0_4 = arith.constant 0 : index
    %2 = vector.load %arg2[%c0_2, %c0_3, %c0_4] : memref<1x8x64xf32, #tpu.memory_space<vmem>>, vector<1x8x64xf32>
    %3 = vector.shape_cast %2 : vector<1x8x64xf32> to vector<8x64xf32>
    %4 = vector.extract_strided_slice %1 {offsets = [0, 0], sizes = [8, 8], strides = [1, 1]} : vector<8x32xf32> to vector<8x8xf32>
    %5 = vector.extract_strided_slice %3 {offsets = [0, 0], sizes = [8, 8], strides = [1, 1]} : vector<8x64xf32> to vector<8x8xf32>
    %6 = vector.extract_strided_slice %3 {offsets = [0, 32], sizes = [8, 8], strides = [1, 1]} : vector<8x64xf32> to vector<8x8xf32>
    %7 = tpu.transpose %5, [1, 0] : vector<8x8xf32> -> vector<8x8xf32>
    %cst = arith.constant dense<0.000000e+00> : vector<8x8xf32>
    %8 = tpu.matmul %4, %7, %cst {dimension_numbers = #tpu.dot_dimension_numbers<[1], [0], [0], [1], [0, 0, 1, 1], [], []>} : vector<8x8xf32>, vector<8x8xf32>, vector<8x8xf32> -> vector<8x8xf32>
    %cst_5 = arith.constant 0.353553385 : f32
    %9 = vector.broadcast %cst_5 : f32 to vector<8x8xf32>
    %10 = arith.mulf %8, %9 : vector<8x8xf32>
    %cst_6 = arith.constant dense<0xFF800000> : vector<8xf32>
    %11 = vector.multi_reduction <maximumf>, %10, %cst_6 [1] : vector<8x8xf32> to vector<8xf32>
    %12 = vector.shape_cast %11 : vector<8xf32> to vector<8x1xf32>
    %13 = vector.broadcast %12 : vector<8x1xf32> to vector<8x8xf32>
    %14 = arith.subf %10, %13 : vector<8x8xf32>
    %15 = math.exp %14 : vector<8x8xf32>
    %cst_7 = arith.constant dense<0.000000e+00> : vector<8xf32>
    %16 = vector.multi_reduction <add>, %15, %cst_7 [1] : vector<8x8xf32> to vector<8xf32>
    %17 = vector.shape_cast %16 : vector<8xf32> to vector<8x1xf32>
    %cst_8 = arith.constant dense<0.000000e+00> : vector<8x8xf32>
    %18 = tpu.matmul %15, %6, %cst_8 {dimension_numbers = #tpu.dot_dimension_numbers<[1], [0], [0], [1], [0, 0, 1, 1], [], []>} : vector<8x8xf32>, vector<8x8xf32>, vector<8x8xf32> -> vector<8x8xf32>
    %19 = tpu.reciprocal %17 {approx = true} : vector<8x1xf32> -> vector<8x1xf32>
    %20 = vector.broadcast %19 : vector<8x1xf32> to vector<8x8xf32>
    %21 = arith.mulf %18, %20 : vector<8x8xf32>
    %c0_9 = arith.constant 0 : index
    %c0_10 = arith.constant 0 : index
    %c0_11 = arith.constant 0 : index
    %22 = vector.load %arg3[%c0_9, %c0_10, %c0_11] : memref<1x8x32xf32, #tpu.memory_space<vmem>>, vector<1x8x8xf32>
    %23 = vector.shape_cast %22 : vector<1x8x8xf32> to vector<8x8xf32>
    %24 = vector.shape_cast %21 : vector<8x8xf32> to vector<1x8x8xf32>
    tpu.vector_store %arg3[%c0_9, %c0_10, %c0_11], %24 {strides = array<i32>} : memref<1x8x32xf32, #tpu.memory_space<vmem>>, vector<1x8x8xf32>,
    %25 = vector.extract_strided_slice %1 {offsets = [0, 8], sizes = [8, 8], strides = [1, 1]} : vector<8x32xf32> to vector<8x8xf32>
    %26 = vector.extract_strided_slice %3 {offsets = [0, 8], sizes = [8, 8], strides = [1, 1]} : vector<8x64xf32> to vector<8x8xf32>
    %27 = vector.extract_strided_slice %3 {offsets = [0, 40], sizes = [8, 8], strides = [1, 1]} : vector<8x64xf32> to vector<8x8xf32>
    %28 = tpu.transpose %26, [1, 0] : vector<8x8xf32> -> vector<8x8xf32>
    %cst_12 = arith.constant dense<0.000000e+00> : vector<8x8xf32>
    %29 = tpu.matmul %25, %28, %cst_12 {dimension_numbers = #tpu.dot_dimension_numbers<[1], [0], [0], [1], [0, 0, 1, 1], [], []>} : vector<8x8xf32>, vector<8x8xf32>, vector<8x8xf32> -> vector<8x8xf32>
    %cst_13 = arith.constant 0.353553385 : f32
    %30 = vector.broadcast %cst_13 : f32 to vector<8x8xf32>
    %31 = arith.mulf %29, %30 : vector<8x8xf32>
    %cst_14 = arith.constant dense<0xFF800000> : vector<8xf32>
    %32 = vector.multi_reduction <maximumf>, %31, %cst_14 [1] : vector<8x8xf32> to vector<8xf32>
    %33 = vector.shape_cast %32 : vector<8xf32> to vector<8x1xf32>
    %34 = vector.broadcast %33 : vector<8x1xf32> to vector<8x8xf32>
    %35 = arith.subf %31, %34 : vector<8x8xf32>
    %36 = math.exp %35 : vector<8x8xf32>
    %cst_15 = arith.constant dense<0.000000e+00> : vector<8xf32>
    %37 = vector.multi_reduction <add>, %36, %cst_15 [1] : vector<8x8xf32> to vector<8xf32>
    %38 = vector.shape_cast %37 : vector<8xf32> to vector<8x1xf32>
    %cst_16 = arith.constant dense<0.000000e+00> : vector<8x8xf32>
    %39 = tpu.matmul %36, %27, %cst_16 {dimension_numbers = #tpu.dot_dimension_numbers<[1], [0], [0], [1], [0, 0, 1, 1], [], []>} : vector<8x8xf32>, vector<8x8xf32>, vector<8x8xf32> -> vector<8x8xf32>
    %40 = tpu.reciprocal %38 {approx = true} : vector<8x1xf32> -> vector<8x1xf32>
    %41 = vector.broadcast %40 : vector<8x1xf32> to vector<8x8xf32>
    %42 = arith.mulf %39, %41 : vector<8x8xf32>
    %c0_17 = arith.constant 0 : index
    %c0_18 = arith.constant 0 : index
    %c8 = arith.constant 8 : index
    %43 = vector.load %arg3[%c0_17, %c0_18, %c8] : memref<1x8x32xf32, #tpu.memory_space<vmem>>, vector<1x8x8xf32>
    %44 = vector.shape_cast %43 : vector<1x8x8xf32> to vector<8x8xf32>
    %45 = vector.shape_cast %42 : vector<8x8xf32> to vector<1x8x8xf32>
    tpu.vector_store %arg3[%c0_17, %c0_18, %c8], %45 {strides = array<i32>} : memref<1x8x32xf32, #tpu.memory_space<vmem>>, vector<1x8x8xf32>,
    %46 = vector.extract_strided_slice %1 {offsets = [0, 16], sizes = [8, 8], strides = [1, 1]} : vector<8x32xf32> to vector<8x8xf32>
    %47 = vector.extract_strided_slice %3 {offsets = [0, 16], sizes = [8, 8], strides = [1, 1]} : vector<8x64xf32> to vector<8x8xf32>
    %48 = vector.extract_strided_slice %3 {offsets = [0, 48], sizes = [8, 8], strides = [1, 1]} : vector<8x64xf32> to vector<8x8xf32>
    %49 = tpu.transpose %47, [1, 0] : vector<8x8xf32> -> vector<8x8xf32>
    %cst_19 = arith.constant dense<0.000000e+00> : vector<8x8xf32>
    %50 = tpu.matmul %46, %49, %cst_19 {dimension_numbers = #tpu.dot_dimension_numbers<[1], [0], [0], [1], [0, 0, 1, 1], [], []>} : vector<8x8xf32>, vector<8x8xf32>, vector<8x8xf32> -> vector<8x8xf32>
    %cst_20 = arith.constant 0.353553385 : f32
    %51 = vector.broadcast %cst_20 : f32 to vector<8x8xf32>
    %52 = arith.mulf %50, %51 : vector<8x8xf32>
    %cst_21 = arith.constant dense<0xFF800000> : vector<8xf32>
    %53 = vector.multi_reduction <maximumf>, %52, %cst_21 [1] : vector<8x8xf32> to vector<8xf32>
    %54 = vector.shape_cast %53 : vector<8xf32> to vector<8x1xf32>
    %55 = vector.broadcast %54 : vector<8x1xf32> to vector<8x8xf32>
    %56 = arith.subf %52, %55 : vector<8x8xf32>
    %57 = math.exp %56 : vector<8x8xf32>
    %cst_22 = arith.constant dense<0.000000e+00> : vector<8xf32>
    %58 = vector.multi_reduction <add>, %57, %cst_22 [1] : vector<8x8xf32> to vector<8xf32>
    %59 = vector.shape_cast %58 : vector<8xf32> to vector<8x1xf32>
    %cst_23 = arith.constant dense<0.000000e+00> : vector<8x8xf32>
    %60 = tpu.matmul %57, %48, %cst_23 {dimension_numbers = #tpu.dot_dimension_numbers<[1], [0], [0], [1], [0, 0, 1, 1], [], []>} : vector<8x8xf32>, vector<8x8xf32>, vector<8x8xf32> -> vector<8x8xf32>
    %61 = tpu.reciprocal %59 {approx = true} : vector<8x1xf32> -> vector<8x1xf32>
    %62 = vector.broadcast %61 : vector<8x1xf32> to vector<8x8xf32>
    %63 = arith.mulf %60, %62 : vector<8x8xf32>
    %c0_24 = arith.constant 0 : index
    %c0_25 = arith.constant 0 : index
    %c16 = arith.constant 16 : index
    %64 = vector.load %arg3[%c0_24, %c0_25, %c16] : memref<1x8x32xf32, #tpu.memory_space<vmem>>, vector<1x8x8xf32>
    %65 = vector.shape_cast %64 : vector<1x8x8xf32> to vector<8x8xf32>
    %66 = vector.shape_cast %63 : vector<8x8xf32> to vector<1x8x8xf32>
    tpu.vector_store %arg3[%c0_24, %c0_25, %c16], %66 {strides = array<i32>} : memref<1x8x32xf32, #tpu.memory_space<vmem>>, vector<1x8x8xf32>,
    %67 = vector.extract_strided_slice %1 {offsets = [0, 24], sizes = [8, 8], strides = [1, 1]} : vector<8x32xf32> to vector<8x8xf32>
    %68 = vector.extract_strided_slice %3 {offsets = [0, 24], sizes = [8, 8], strides = [1, 1]} : vector<8x64xf32> to vector<8x8xf32>
    %69 = vector.extract_strided_slice %3 {offsets = [0, 56], sizes = [8, 8], strides = [1, 1]} : vector<8x64xf32> to vector<8x8xf32>
    %70 = tpu.transpose %68, [1, 0] : vector<8x8xf32> -> vector<8x8xf32>
    %cst_26 = arith.constant dense<0.000000e+00> : vector<8x8xf32>
    %71 = tpu.matmul %67, %70, %cst_26 {dimension_numbers = #tpu.dot_dimension_numbers<[1], [0], [0], [1], [0, 0, 1, 1], [], []>} : vector<8x8xf32>, vector<8x8xf32>, vector<8x8xf32> -> vector<8x8xf32>
    %cst_27 = arith.constant 0.353553385 : f32
    %72 = vector.broadcast %cst_27 : f32 to vector<8x8xf32>
    %73 = arith.mulf %71, %72 : vector<8x8xf32>
    %cst_28 = arith.constant dense<0xFF800000> : vector<8xf32>
    %74 = vector.multi_reduction <maximumf>, %73, %cst_28 [1] : vector<8x8xf32> to vector<8xf32>
    %75 = vector.shape_cast %74 : vector<8xf32> to vector<8x1xf32>
    %76 = vector.broadcast %75 : vector<8x1xf32> to vector<8x8xf32>
    %77 = arith.subf %73, %76 : vector<8x8xf32>
    %78 = math.exp %77 : vector<8x8xf32>
    %cst_29 = arith.constant dense<0.000000e+00> : vector<8xf32>
    %79 = vector.multi_reduction <add>, %78, %cst_29 [1] : vector<8x8xf32> to vector<8xf32>
    %80 = vector.shape_cast %79 : vector<8xf32> to vector<8x1xf32>
    %cst_30 = arith.constant dense<0.000000e+00> : vector<8x8xf32>
    %81 = tpu.matmul %78, %69, %cst_30 {dimension_numbers = #tpu.dot_dimension_numbers<[1], [0], [0], [1], [0, 0, 1, 1], [], []>} : vector<8x8xf32>, vector<8x8xf32>, vector<8x8xf32> -> vector<8x8xf32>
    %82 = tpu.reciprocal %80 {approx = true} : vector<8x1xf32> -> vector<8x1xf32>
    %83 = vector.broadcast %82 : vector<8x1xf32> to vector<8x8xf32>
    %84 = arith.mulf %81, %83 : vector<8x8xf32>
    %c0_31 = arith.constant 0 : index
    %c0_32 = arith.constant 0 : index
    %c24 = arith.constant 24 : index
    %85 = vector.load %arg3[%c0_31, %c0_32, %c24] : memref<1x8x32xf32, #tpu.memory_space<vmem>>, vector<1x8x8xf32>
    %86 = vector.shape_cast %85 : vector<1x8x8xf32> to vector<8x8xf32>
    %87 = vector.shape_cast %84 : vector<8x8xf32> to vector<1x8x8xf32>
    tpu.vector_store %arg3[%c0_31, %c0_32, %c24], %87 {strides = array<i32>} : memref<1x8x32xf32, #tpu.memory_space<vmem>>, vector<1x8x8xf32>,
    return
  }
  func.func @transform_0(%arg0: i32) -> (i32, i32, i32) {
    %c0_i32 = arith.constant 0 : i32
    %c0_i32_0 = arith.constant 0 : i32
    %c0_i32_1 = arith.constant 0 : i32
    return %arg0, %c0_i32, %c0_i32_0 : i32, i32, i32
  }
  func.func @transform_1(%arg0: i32) -> (i32, i32, i32) {
    %c0_i32 = arith.constant 0 : i32
    %c0_i32_0 = arith.constant 0 : i32
    %c0_i32_1 = arith.constant 0 : i32
    return %arg0, %c0_i32, %c0_i32_0 : i32, i32, i32
  }
  func.func @transform_2(%arg0: i32) -> (i32, i32, i32) {
    %c0_i32 = arith.constant 0 : i32
    %c0_i32_0 = arith.constant 0 : i32
    %c0_i32_1 = arith.constant 0 : i32
    return %arg0, %c0_i32, %c0_i32_0 : i32, i32, i32
  }
}

</mosaic_0001>

<bundles_post_ra>
// kernel: _lambda_.28
= control target key start
LH: loop header
LB: loop body
LE: loop exit
PB: predicated region body
PF: predicated region fallthrough
CT: control target
= control target key end

     0   :  { %s607_s9 = smov 0   ;;  %s673_s0 = inlined_call_operand.vmem [shape: f32[2,8,96], index: 0, kind: input, shape index: {}]   ;;  %s674_s1 = inlined_call_operand.vmem [shape: f32[2,8,8], index: 1, kind: input, shape index: {}]   ;;  %s675_s2 = inlined_call_operand.vmem [shape: f32[2,8,32], index: 2, kind: output, shape index: {}]  }
   0x1 LB: > { %s510_s10 = sadd.s32 4294967295, %s576_s9   ;;  %p514_p0 = scmp.ge.s32.totalorder %s576_s9, 1  ;;  %s576_s9 = sphi %s607_s9, %s12_s9  }
   0x2   : > { %p120_p1 = scmp.lt.s32.totalorder %s576_s9, 3 }
   0x4   : > { %p121_p2 = pnand %p514_p0, %p120_p1 }
   0x5   : > { %p144_p3 = scmp.lt.s32.totalorder (!%p121_p2), %s510_s10, 1  ;;  %s578_s15 = smov (!%p121_p2), 88  }
   0x6   : > { %124 = sbr.rel (%p121_p2) target bundleno = 921 (0x399), region = 28  ;;  %s579_s16 = smov (!%p121_p2), 96  }
   0x7   : > { %s580_s17 = smov (!%p121_p2), 120   ;;  %s581_s18 = smov (!%p121_p2), 64  }
   0x8   : > { %s582_s19 = smov (!%p121_p2), 72   ;;  %s583_s20 = smov (!%p121_p2), 80  }
   0x9   : > { %s584_s21 = smov (!%p121_p2), 104   ;;  %s585_s22 = smov (!%p121_p2), 112  }
   0xa   : > { %s586_s26 = smov (!%p121_p2), 56   ;;  %s587_s27 = smov (!%p121_p2), 48  }
   0xb   : > { %s677_s10 = smov (!%p144_p3, %s510_s10), 1  ;;  %vm161_vm0 = vcmask 64512   ;;  %s588_s3 = smov 40   ;;  %vm297_vm1 = vcmask 130112   ;;  %vm370_vm2 = vcmask 195712   ;;  %vm443_vm3 = vcmask 261312  }
   0xc   : > { %s615_s11 = sshll.u32 %s677_s10, 3  ;;  %s589_s4 = smov 8  }
   0xd   : > { %s147_s14 = scalar_lea.vmem %s673_s0, %s615_s11  ;;  %s151_s25 = scalar_lea.vmem %s674_s1, %s615_s11 }
   0xe   : > { %v621_v0 = vld [vmem:[%s147_s14] sm:$0xff]  ;;  %s658_s30 = scalar_lea.vmem %s675_s2, %s615_s11  ;;  %s590_s5 = smov 16  }
   0xf   : > { %228 = vrot.lane.b32.xlu1 %v621_v0, %s578_s15  ;;  %159 = vrot.lane.b32.xlu0 %v621_v0, %s579_s16  ;;  %v157_v7 = vld [vmem:[%s151_s25] sm:$0xff]  ;;  %s591_s6 = smov 24  }
  0x10   : > { %197 = vrot.lane.b32.xlu2 %v621_v0, %s581_s18 }
  0x17   : > { %226 = vrot.lane.b32.xlu1 %v621_v0, %s580_s17 }
  0x18   : > { %301 = vrot.lane.b32.xlu2 %v621_v0, %s583_s20 }
  0x1f   : > { %374 = vrot.lane.b32.xlu1 %v621_v0, %s582_s19 }
  0x20   : > { %299 = vrot.lane.b32.xlu2 %v621_v0, %s585_s22 }
  0x27   : > { %372 = vrot.lane.b32.xlu1 %v621_v0, %s584_s21 }
  0x6a   : > { %v198_v14 = vpop.permute.xlu2 %197 }
  0x6b   : > { %218 = vmatpush.msra.mxu1 %v198_v14 }
  0x72   : > { %v302_v18 = vpop.permute.xlu2 %301 }
  0x73   : > { %524 = vmatpush.xpose.msk.msrb.mxu1 %vm161_vm0, %v302_v18 }
  0x7a   : > { %v300_v23 = vpop.permute.xlu2 %299 }
  0x81   : > { %v229_v1 = vpop.permute.xlu1 %228  ;;  %v160_v2 = vpop.permute.xlu0 %159 }
  0x82   : > { %518 = vmatpush.xpose.msk.msra.mxu0 %vm161_vm0, %v160_v2  ;;  %521 = vmatpush.xpose.msk.msra.mxu2 %vm161_vm0, %v229_v1 }
  0x85   : > { %519 = vmatmul.msk.f32.vlgmr.msra.gmra.mxu0 %vm161_vm0, %v621_v0 }
  0x89   : > { %v227_v3 = vpop.permute.xlu1 %226 }
  0x8a   : > { %522 = vmatmul.msk.f32.vlgmr.msra.gmra.mxu2 %vm161_vm0, %v227_v3 }
  0x91   : > { %v375_v4 = vpop.permute.xlu1 %374 }
  0x92   : > { %527 = vmatpush.xpose.msk.msrb.mxu0 %vm161_vm0, %v375_v4 }
  0x99   : > { %v373_v5 = vpop.permute.xlu1 %372 }
  0x9a   : > { %528 = vmatmul.msk.f32.vlgmr.msrb.gmra.mxu0 %vm161_vm0, %v373_v5 }
 0x102   : > { %v183_v6 = vpop.f32.mrf.mxu0 }
 0x103   : > { %v186_v8 = vmul.f32 0.35355338, %v183_v6 }
 0x105   : > { %v187_v9 = vadd.f32 %v186_v8, %v157_v7 }
 0x107   : > { %v188_v10 = vsel %vm161_vm0, %v187_v9, -inf }
 0x108   : > { %189 = vmax.xlane.f32.xlu0 %v188_v10 }
 0x10d   : > { %v251_v11 = vpop.f32.mrf.mxu2 }
 0x10e   : > { %v254_v12 = vmul.f32 0.35355338, %v251_v11 }
 0x110   : > { %v255_v13 = vadd.f32 %v254_v12, %v157_v7 }
 0x112   : > { %v256_v15 = vsel %vm161_vm0, %v255_v13, -inf }
 0x113   : > { %257 = vmax.xlane.f32.xlu2 %v256_v15 }
 0x117   : > { %v397_v16 = vpop.f32.mrf.mxu0 }
 0x118   : > { %v400_v17 = vmul.f32 0.35355338, %v397_v16 }
 0x11a   : > { %v401_v19 = vadd.f32 %v400_v17, %v157_v7 }
 0x11c   : > { %v402_v20 = vsel %vm161_vm0, %v401_v19, -inf }
 0x11d   : > { %403 = vmax.xlane.f32.xlu0 %v402_v20 }
 0x12b   : > { %338 = vrot.lane.b32.xlu2 %v621_v0, %s587_s27 }
 0x131   : > { %265 = vrot.lane.b32.xlu0 %v621_v0, %s586_s26 }
 0x17b   : > { %v190_v21 = vpop.xlane.xlu0 %189 }
 0x17c   : > { %v191_v22 = vsub.f32 %v187_v9, %v190_v21 }
 0x17e   : > { %v192_v24 = vmul.f32 1.442695, %v191_v22 }
 0x180   : > { %554 = vpow2.f32 %v192_v24 }
 0x186   : > { %v555_v25 = vpop.eup %554  ;;  %v258_v26 = vpop.xlane.xlu2 %257 }
 0x187   : > { %v259_v27 = vsub.f32 %v255_v13, %v258_v26  ;;  %520 = vmatmul.msk.f32.vlgmr.msra.gmra.mxu1 %vm161_vm0, %v555_v25  ;;  %v194_v32 = vsel %vm161_vm0, %v555_v25, 0.0 }
 0x189   : > { %v260_v28 = vmul.f32 1.442695, %v259_v27 }
 0x18b   : > { %556 = vpow2.f32 %v260_v28 }
 0x18e   : > { %v339_v47 = vpop.permute.xlu2 %338 }
 0x18f   : > { %525 = vmatmul.msk.f32.vlgmr.msrb.gmra.mxu1 %vm161_vm0, %v300_v23 }
 0x190   : > { %v404_v31 = vpop.xlane.xlu0 %403 }
 0x191   : > { %v557_v29 = vpop.eup %556  ;;  %v405_v43 = vsub.f32 %v401_v19, %v404_v31 }
 0x192   : > { %v262_v30 = vsel %vm161_vm0, %v557_v29, 0.0 }
 0x193   : > { %263 = vadd.xlane.f32.xlu0 %v262_v30  ;;  %v406_v44 = vmul.f32 1.442695, %v405_v43 }
 0x19b   : > { %195 = vadd.xlane.f32.xlu0 %v194_v32 }
 0x1a3   : > { %v266_v33 = vpop.permute.xlu0 %265 }
 0x1a4   : > { %286 = vmatpush.msra.mxu3 %v266_v33 }
 0x1a5   : > { %523 = vmatmul.msk.f32.vlgmr.msra.gmra.mxu3 %vm161_vm0, %v557_v29 }
 0x1a6   : > { %359 = vmatpush.msrb.mxu3 %v339_v47 }
 0x204   : > { %v220_v34 = vpop.f32.mrf.mxu1 }
 0x206   : > { %v264_v35 = vpop.xlane.xlu0 %263 }
 0x20c   : > { %v324_v36 = vpop.f32.mrf.mxu1 }
 0x20d   : > { %v327_v37 = vmul.f32 0.35355338, %v324_v36 }
 0x20e   : > { %v196_v38 = vpop.xlane.xlu0 %195 }
 0x20f   : > { %v328_v39 = vadd.f32 %v327_v37, %v157_v7  ;;  %558 = vrcp.f32 %v196_v38 }
 0x210   : > { %560 = vpow2.f32 %v406_v44 }
 0x211   : > { %v329_v40 = vsel %vm161_vm0, %v328_v39, -inf  ;;  %562 = vrcp.f32 %v264_v35 }
 0x212   : > { %330 = vmax.xlane.f32.xlu1 %v329_v40 }
 0x215   : > { %v559_v41 = vpop.eup %558 }
 0x216   : > { %v224_v42 = vmul.f32 %v559_v41, %v220_v34  ;;  %v561_v45 = vpop.eup %560 }
 0x217   : > { %v408_v46 = vsel %vm161_vm0, %v561_v45, 0.0  ;;  %v563_v48 = vpop.eup %562 }
 0x218   : > { %225 = vst.msk [vmem:[%s658_s30] sm:$0xff] %vm161_vm0, %v224_v42 }
 0x228   : > { %v288_v49 = vpop.f32.mrf.mxu3 }
 0x229   : > { %v292_v50 = vmul.f32 %v563_v48, %v288_v49 }
 0x22b   : > { %411 = vrot.lane.b32.xlu1 %v621_v0, %s588_s3  ;;  %294 = vrot.lane.b32.xlu0 %v292_v50, %s589_s4 }
 0x255   : > { %409 = vadd.xlane.f32.xlu1 %v408_v46 }
 0x285   : > { %v331_v51 = vpop.xlane.xlu1 %330 }
 0x286   : > { %v332_v52 = vsub.f32 %v328_v39, %v331_v51 }
 0x288   : > { %v333_v53 = vmul.f32 1.442695, %v332_v52 }
 0x28a   : > { %564 = vpow2.f32 %v333_v53 }
 0x290   : > { %v565_v54 = vpop.eup %564 }
 0x291   : > { %526 = vmatmul.msk.f32.vlgmr.msrb.gmra.mxu3 %vm161_vm0, %v565_v54  ;;  %v335_v55 = vsel %vm161_vm0, %v565_v54, 0.0 }
 0x292   : > { %336 = vadd.xlane.f32.xlu2 %v335_v55 }
 0x29d   : > { %v412_v56 = vpop.permute.xlu1 %411  ;;  %v295_v57 = vpop.permute.xlu0 %294 }
 0x29e   : > { %432 = vmatpush.msrb.mxu2 %v412_v56  ;;  %298 = vst.msk [vmem:[%s658_s30] sm:$0xff] %vm297_vm1, %v295_v57 }
 0x29f   : > { %529 = vmatmul.msk.f32.vlgmr.msrb.gmra.mxu2 %vm161_vm0, %v561_v45 }
 0x2c8   : > { %v410_v62 = vpop.xlane.xlu1 %409 }
 0x305   : > { %v337_v58 = vpop.xlane.xlu2 %336 }
 0x306   : > { %566 = vrcp.f32 %v337_v58 }
 0x307   : > { %568 = vrcp.f32 %v410_v62 }
 0x30c   : > { %v567_v59 = vpop.eup %566 }
 0x30d   : > { %v569_v63 = vpop.eup %568 }
 0x314   : > { %v361_v60 = vpop.f32.mrf.mxu3 }
 0x315   : > { %v365_v61 = vmul.f32 %v567_v59, %v361_v60 }
 0x317   : > { %367 = vrot.lane.b32.xlu2 %v365_v61, %s590_s5 }
 0x322   : > { %v434_v0 = vpop.f32.mrf.mxu2 }
 0x323   : > { %v438_v1 = vmul.f32 %v569_v63, %v434_v0 }
 0x325   : > { %440 = vrot.lane.b32.xlu1 %v438_v1, %s591_s6 }
 0x371   : > { %v368_v2 = vpop.permute.xlu2 %367 }
 0x372   : > { %371 = vst.msk [vmem:[%s658_s30] sm:$0xff] %vm370_vm2, %v368_v2 }
 0x397   : > { %v441_v3 = vpop.permute.xlu1 %440 }
 0x398   : > { %444 = vst.msk [vmem:[%s658_s30] sm:$0xff] %vm443_vm3, %v441_v3 }
 0x399 PF: > { %s12_s9 = sadd.s32 1, %s576_s9  }
 0x39a   : > { %p9_p4 = scmp.ge.s32.totalorder %s12_s9, 4  }
 0x39c   :  { %11 = sbr.rel (!%p9_p4) target bundleno = 1 (0x1), region = 61 }

// kernel: _lambda_.29
= control target key start
LH: loop header
LB: loop body
LE: loop exit
PB: predicated region body
PF: predicated region fallthrough
CT: control target
= control target key end

     0   :  { %vm33_vm0 = vcmask 261120   ;;  %v152_v17 = vmov 32.0   ;;  %s235_s1 = inlined_call_operand.vmem [shape: f32[32,32], index: 1, kind: input, shape index: {}]   ;;  %s236_s2 = inlined_call_operand.vmem [shape: f32[1,32], index: 2, kind: input, shape index: {}]   ;;  %s237_s0 = inlined_call_operand.vmem [shape: f32[16,32], index: 0, kind: input, shape index: {}]   ;;  %s238_s3 = inlined_call_operand.vmem [shape: f32[16,32], index: 3, kind: input, shape index: {}]   ;;  %s239_s4 = inlined_call_operand.vmem [shape: f32[1,32], index: 4, kind: input, shape index: {}]   ;;  %s240_s5 = inlined_call_operand.vmem [shape: f32[1,32], index: 5, kind: input, shape index: {}]   ;;  %s241_s6 = inlined_call_operand.vmem [shape: f32[16,32], index: 6, kind: output, shape index: {}]  }
   0x1   :  { %v28_v0 = vld [vmem:[%s235_s1 + $0x18] sm:$0xff]  ;;  %v27_v1 = vld [vmem:[%s235_s1 + $0x10] sm:$0xff]  ;;  %v26_v2 = vld [vmem:[%s235_s1 + $0x8] sm:$0xff]  ;;  %146 = vrcp.f32 %v152_v17 }
   0x2   :  { %52 = vmatpush.msra.mxu0 %v28_v0  ;;  %138 = vmatpush.msra.mxu1 %v28_v0  ;;  %v25_v3 = vld [vmem:[%s235_s1] sm:$0xff]  ;;  %v24_v5 = vld [vmem:[%s237_s0 + $0x8] sm:$0xff] }
   0x3   :  { %v23_v4 = vld [vmem:[%s237_s0] sm:$0xff]  ;;  %v64_v13 = vld [vmem:[%s238_s3 + $0x8] sm:$0xff] }
   0x4   :  { %53 = vmatpush.msra.mxu0 %v27_v1  ;;  %139 = vmatpush.msra.mxu1 %v27_v1  ;;  %v143_v6 = vld [vmem:[%s236_s2] ss:$0 sm:$0xff] }
   0x5   :  { %v63_v8 = vld [vmem:[%s238_s3] sm:$0xff] }
   0x6   :  { %54 = vmatpush.msra.mxu0 %v26_v2  ;;  %140 = vmatpush.msra.mxu1 %v26_v2  ;;  %v144_v48 = vld [vmem:[%s239_s4] ss:$0 sm:$0xff] }
   0x7   :  { %v147_v18 = vpop.eup %146  ;;  %v145_v51 = vld [vmem:[%s240_s5] ss:$0 sm:$0xff] }
   0x8   :  { %55 = vmatpush.msra.mxu0 %v25_v3  ;;  %141 = vmatpush.msra.mxu1 %v25_v3  ;;  %v74_v19 = vmul.f32 32.0, %v147_v18  ;;  %vm78_vm1 = vweird.f32 %v147_v18 }
   0x9   :  { %136 = vmatmul.msk.f32.vlgmr.msra.gmra.mxu0 %vm33_vm0, %v23_v4  ;;  %137 = vmatmul.msk.f32.vlgmr.msra.gmra.mxu1 %vm33_vm0, %v24_v5 }
   0xa   :  { %v75_v20 = vsub.f32 1.0, %v74_v19 }
   0xc   :  { %v76_v21 = vmul.f32 %v147_v18, %v75_v20 }
   0xe   :  { %v77_v22 = vadd.f32 %v147_v18, %v76_v21 }
  0x10   :  { %v79_v23 = vsel %vm78_vm1, %v147_v18, %v77_v22 }
  0x86   :  { %v57_v7 = vpop.f32.mrf.mxu0  ;;  %v60_v9 = vpop.f32.mrf.mxu1 }
  0x87   :  { %v58_v10 = vadd.f32 %v143_v6, %v57_v7  ;;  %v61_v12 = vadd.f32 %v143_v6, %v60_v9 }
  0x89   :  { %v65_v11 = vadd.f32 %v63_v8, %v58_v10  ;;  %v66_v15 = vadd.f32 %v64_v13, %v61_v12 }
  0x8b   :  { %v67_v14 = vsel %vm33_vm0, %v65_v11, 0.0  ;;  %v70_v16 = vsel %vm33_vm0, %v66_v15, 0.0 }
  0x8c   :  { %68 = vadd.xlane.f32.xlu0 %v67_v14 }
  0x94   :  { %71 = vadd.xlane.f32.xlu0 %v70_v16 }
  0xff   :  { %v69_v24 = vpop.xlane.xlu0 %68 }
 0x100   :  { %v80_v25 = vmul.f32 %v79_v23, %v69_v24 }
 0x102   :  { %v82_v26 = vsub.f32 %v65_v11, %v80_v25 }
 0x104   :  { %v84_v27 = vmul.f32 %v82_v26, %v82_v26 }
 0x106   :  { %v86_v28 = vsel %vm33_vm0, %v84_v27, 0.0 }
 0x107   :  { %87 = vadd.xlane.f32.xlu1 %v86_v28  ;;  %v72_v29 = vpop.xlane.xlu0 %71 }
 0x108   :  { %v81_v30 = vmul.f32 %v79_v23, %v72_v29 }
 0x10a   :  { %v83_v31 = vsub.f32 %v66_v15, %v81_v30 }
 0x10c   :  { %v85_v32 = vmul.f32 %v83_v31, %v83_v31 }
 0x10e   :  { %v89_v33 = vsel %vm33_vm0, %v85_v32, 0.0 }
 0x10f   :  { %90 = vadd.xlane.f32.xlu1 %v89_v33 }
 0x17a   :  { %v88_v34 = vpop.xlane.xlu1 %87 }
 0x17b   :  { %v92_v35 = vmul.f32 %v88_v34, %v79_v23 }
 0x17d   :  { %v94_v36 = vadd.f32 1e-05, %v92_v35 }
 0x17f   :  { %148 = vrsqrt.f32 %v94_v36  ;;  %vm102_vm3 = vweird.f32 %v94_v36 }
 0x182   :  { %v91_v37 = vpop.xlane.xlu1 %90 }
 0x183   :  { %v93_v38 = vmul.f32 %v91_v37, %v79_v23 }
 0x185   :  { %v149_v39 = vpop.eup %148  ;;  %v95_v40 = vadd.f32 1e-05, %v93_v38 }
 0x186   :  { %v97_v41 = vmul.f32 %v149_v39, %v94_v36  ;;  %vm103_vm2 = vweird.f32 %v149_v39 }
 0x187   :  { %150 = vrsqrt.f32 %v95_v40  ;;  %vm104_vm4 = vmor %vm102_vm3, %vm103_vm2  ;;  %vm112_vm6 = vweird.f32 %v95_v40 }
 0x188   :  { %v98_v42 = vmul.f32 %v149_v39, %v97_v41 }
 0x18a   :  { %v99_v43 = vmul.f32 0.5, %v98_v42 }
 0x18c   :  { %v100_v44 = vsub.f32 1.5, %v99_v43 }
 0x18d   :  { %v151_v45 = vpop.eup %150 }
 0x18e   :  { %v101_v46 = vmul.f32 %v149_v39, %v100_v44  ;;  %v107_v47 = vmul.f32 %v151_v45, %v95_v40  ;;  %vm113_vm5 = vweird.f32 %v151_v45 }
 0x18f   :  { %vm114_vm7 = vmor %vm112_vm6, %vm113_vm5 }
 0x190   :  { %v105_v49 = vsel %vm104_vm4, %v149_v39, %v101_v46  ;;  %v108_v50 = vmul.f32 %v151_v45, %v107_v47 }
 0x191   :  { %v116_v52 = vmul.f32 %v105_v49, %v82_v26 }
 0x192   :  { %v109_v53 = vmul.f32 0.5, %v108_v50 }
 0x193   :  { %v122_v54 = vmul.f32 %v144_v48, %v116_v52 }
 0x194   :  { %v110_v55 = vsub.f32 1.5, %v109_v53 }
 0x195   :  { %v128_v56 = vadd.f32 %v145_v51, %v122_v54 }
 0x196   :  { %v111_v57 = vmul.f32 %v151_v45, %v110_v55 }
 0x197   :  { %130 = vst.msk [vmem:[%s241_s6] sm:$0xff] %vm33_vm0, %v128_v56 }
 0x198   :  { %v115_v58 = vsel %vm114_vm7, %v151_v45, %v111_v57 }
 0x199   :  { %v117_v59 = vmul.f32 %v115_v58, %v83_v31 }
 0x19b   :  { %v123_v60 = vmul.f32 %v144_v48, %v117_v59 }
 0x19d   :  { %v129_v61 = vadd.f32 %v145_v51, %v123_v60 }
 0x19f   :  { %131 = vst.msk [vmem:[%s241_s6 + $0x8] sm:$0xff] %vm33_vm0, %v129_v61 }

// kernel: _lambda_.27
= control target key start
LH: loop header
LB: loop body
LE: loop exit
PB: predicated region body
PF: predicated region fallthrough
CT: control target
= control target key end

     0   :  { %vm28_vm0 = vcmask 261120   ;;  %s133_s1 = inlined_call_operand.vmem [shape: f32[32,128], index: 1, kind: input, shape index: {}]   ;;  %s134_s2 = inlined_call_operand.vmem [shape: f32[1,128], index: 2, kind: input, shape index: {}]   ;;  %s135_s0 = inlined_call_operand.vmem [shape: f32[16,32], index: 0, kind: input, shape index: {}]   ;;  %s136_s3 = inlined_call_operand.vmem [shape: f32[16,128], index: 3, kind: output, shape index: {}]  }
   0x1   :  { %v27_v0 = vld [vmem:[%s133_s1 + $0x18] sm:$0xff]  ;;  %v26_v1 = vld [vmem:[%s133_s1 + $0x10] sm:$0xff]  ;;  %v25_v2 = vld [vmem:[%s133_s1 + $0x8] sm:$0xff] }
   0x2   :  { %47 = vmatpush.msra.mxu0 %v27_v0  ;;  %81 = vmatpush.msra.mxu1 %v27_v0  ;;  %v24_v3 = vld [vmem:[%s133_s1] sm:$0xff]  ;;  %v23_v5 = vld [vmem:[%s135_s0 + $0x8] sm:$0xff] }
   0x3   :  { %v22_v4 = vld [vmem:[%s135_s0] sm:$0xff] }
   0x4   :  { %48 = vmatpush.msra.mxu0 %v26_v1  ;;  %82 = vmatpush.msra.mxu1 %v26_v1  ;;  %v85_v6 = vld [vmem:[%s134_s2] ss:$0 sm:$0xff] }
   0x6   :  { %49 = vmatpush.msra.mxu0 %v25_v2  ;;  %83 = vmatpush.msra.mxu1 %v25_v2 }
   0x8   :  { %50 = vmatpush.msra.mxu0 %v24_v3  ;;  %84 = vmatpush.msra.mxu1 %v24_v3 }
   0x9   :  { %79 = vmatmul.msk.f32.vlgmr.msra.gmra.mxu0 %vm28_vm0, %v22_v4  ;;  %80 = vmatmul.msk.f32.vlgmr.msra.gmra.mxu1 %vm28_vm0, %v23_v5 }
  0x86   :  { %v52_v7 = vpop.f32.mrf.mxu0  ;;  %v55_v8 = vpop.f32.mrf.mxu1 }
  0x87   :  { %v71_v9 = vadd.f32 %v85_v6, %v52_v7  ;;  %v72_v10 = vadd.f32 %v85_v6, %v55_v8 }
  0x89   :  { %73 = vst [vmem:[%s136_s3] sm:$0xff] %v71_v9 }
  0x8a   :  { %74 = vst [vmem:[%s136_s3 + $0x8] sm:$0xff] %v72_v10 }

// kernel: _lambda_.30
= control target key start
LH: loop header
LB: loop body
LE: loop exit
PB: predicated region body
PF: predicated region fallthrough
CT: control target
= control target key end

     0   :  { %s1055_s24 = smov 0   ;;  %s1057_s25 = smov 0   ;;  %s1279_s0 = inlined_call_operand.vmem [shape: f32[16,32], index: 0, kind: input, shape index: {}]   ;;  %s1280_s1 = inlined_call_operand.vmem [shape: f32[32,2048], index: 1, kind: input, shape index: {}]   ;;  %s1281_s2 = inlined_call_operand.vmem [shape: f32[1,2048], index: 2, kind: input, shape index: {}]   ;;  %s1282_s3 = inlined_call_operand.vmem [shape: f32[2048,32], index: 3, kind: input, shape index: {}]   ;;  %s1283_s4 = inlined_call_operand.vmem [shape: f32[1,32], index: 4, kind: input, shape index: {}]   ;;  %s1284_s5 = inlined_call_operand.vmem [shape: f32[1,32], index: 5, kind: input, shape index: {}]   ;;  %s1285_s6 = inlined_call_operand.vmem [shape: f32[1,32], index: 6, kind: input, shape index: {}]   ;;  %s1286_s7 = inlined_call_operand.vmem [shape: f32[16,32], index: 7, kind: output, shape index: {}]  }
   0x1   :  { %s1059_s26 = smov 0   ;;  %s1061_s27 = smov 0  }
   0x2   :  { %s1063_s28 = smov 0  }
   0x3 LB: > { %s26_s29 = sadd.s32 1, %s1007_s27  ;;  %p69_p1 = scmp.ne.s32.totalorder %s999_s25, %s995_s24  ;;  %s1011_s28 = sphi %s1063_s28, %s17_s28   ;;  %s1007_s27 = sphi %s1061_s27, %s1290_s27   ;;  %s1003_s26 = sphi %s1059_s26, %s1289_s26   ;;  %s999_s25 = sphi %s1057_s25, %s1288_s25   ;;  %s995_s24 = sphi %s1055_s24, %s1287_s24  }
   0x4   : > { %p27_p0 = scmp.ge.s32.totalorder %s26_s29, 4  ;;  %p70_p2 = scmp.eq.s32.totalorder %s1011_s28, 0 }
   0x5   : > { %s62_s8 = sadd.s32 1, %s999_s25  ;;  %p898_p5 = scmp.ge.s32.totalorder %s1011_s28, 4 }
   0x6   : > { %s1292_s29 = smov (%p27_p0, %s26_s29), 0  ;;  %p71_p3 = por %p70_p2, %p69_p1 }
   0x7   : > { %s59_s30 = ssub.s32 %s1007_s27, %s1292_s29  ;;  %254 = sbr.rel (%p898_p5) target bundleno = 32 (0x20), region = 32 }
   0x8   : > { %p60_p4 = scmp.eq.s32.totalorder %s59_s30, 0 }
   0xa   : > { %s1090_s9 = scalar_select %p60_p4, %s999_s25, %s62_s8  }
   0xc   : > { %257 = sbr.rel (!%p71_p3) target bundleno = 32 (0x20), region = 36  ;;  %s259_s10 = sand.u32 (%p71_p3), 1, %s999_s25  }
   0xd   : > { %s921_s11 = sshll.u32 (%p71_p3), %s1007_s27, 5  ;;  %s899_s12 = sshll.u32 (%p71_p3), %s259_s10, 7 }
   0xe   : > { %s1098_s15 = scalar_lea.vmem (%p71_p3), %s1280_s1, %s921_s11  ;;  %s261_s16 = scalar_lea.vmem (%p71_p3), [#allocation3], %s899_s12 }
   0xf   : > { %v277_v0 = vld [vmem:[%s1098_s15] sm:$0xff] (%p71_p3)  ;;  %v279_v1 = vld [vmem:[%s1098_s15 + $0x8] sm:$0xff] (%p71_p3)  ;;  %v281_v2 = vld [vmem:[%s1098_s15 + $0x10] sm:$0xff] (%p71_p3) }
  0x10   : > { %278 = vst [vmem:[%s261_s16] sm:$0xff] (%p71_p3), %v277_v0  ;;  %v283_v3 = vld [vmem:[%s1098_s15 + $0x18] sm:$0xff] (%p71_p3)  ;;  %v285_v4 = vld [vmem:[%s1098_s15 + $0x80] sm:$0xff] (%p71_p3)  ;;  %v287_v5 = vld [vmem:[%s1098_s15 + $0x88] sm:$0xff] (%p71_p3) }
  0x11   : > { %280 = vst [vmem:[%s261_s16 + $0x8] sm:$0xff] %v279_v1  ;;  %v289_v6 = vld [vmem:[%s1098_s15 + $0x90] sm:$0xff]  ;;  %v291_v7 = vld [vmem:[%s1098_s15 + $0x98] sm:$0xff]  ;;  %v293_v8 = vld [vmem:[%s1098_s15 + $0x100] sm:$0xff] }
  0x12   : > { %282 = vst [vmem:[%s261_s16 + $0x10] sm:$0xff] %v281_v2  ;;  %v295_v9 = vld [vmem:[%s1098_s15 + $0x108] sm:$0xff]  ;;  %v297_v10 = vld [vmem:[%s1098_s15 + $0x110] sm:$0xff]  ;;  %v299_v11 = vld [vmem:[%s1098_s15 + $0x118] sm:$0xff] }
  0x13   : > { %284 = vst [vmem:[%s261_s16 + $0x18] sm:$0xff] %v283_v3  ;;  %v301_v12 = vld [vmem:[%s1098_s15 + $0x180] sm:$0xff]  ;;  %v303_v13 = vld [vmem:[%s1098_s15 + $0x188] sm:$0xff]  ;;  %v305_v14 = vld [vmem:[%s1098_s15 + $0x190] sm:$0xff] }
  0x14   : > { %286 = vst [vmem:[%s261_s16 + $0x20] sm:$0xff] %v285_v4  ;;  %v307_v15 = vld [vmem:[%s1098_s15 + $0x198] sm:$0xff] }
  0x15   : > { %288 = vst [vmem:[%s261_s16 + $0x28] sm:$0xff] %v287_v5 }
  0x16   : > { %290 = vst [vmem:[%s261_s16 + $0x30] sm:$0xff] %v289_v6 }
  0x17   : > { %292 = vst [vmem:[%s261_s16 + $0x38] sm:$0xff] %v291_v7 }
  0x18   : > { %294 = vst [vmem:[%s261_s16 + $0x40] sm:$0xff] %v293_v8 }
  0x19   : > { %296 = vst [vmem:[%s261_s16 + $0x48] sm:$0xff] %v295_v9 }
  0x1a   : > { %298 = vst [vmem:[%s261_s16 + $0x50] sm:$0xff] %v297_v10 }
  0x1b   : > { %300 = vst [vmem:[%s261_s16 + $0x58] sm:$0xff] %v299_v11 }
  0x1c   : > { %302 = vst [vmem:[%s261_s16 + $0x60] sm:$0xff] %v301_v12 }
  0x1d   : > { %304 = vst [vmem:[%s261_s16 + $0x68] sm:$0xff] %v303_v13 }
  0x1e   : > { %306 = vst [vmem:[%s261_s16 + $0x70] sm:$0xff] %v305_v14 }
  0x1f   : > { %308 = vst [vmem:[%s261_s16 + $0x78] sm:$0xff] %v307_v15 }
  0x20 PF: > { %p902_p6 = scmp.ge.s32.totalorder %s1011_s28, 1  ;;  %p330_p7 = scmp.lt.s32.totalorder %s1011_s28, 5 }
  0x22   : > { %p331_p8 = pnand %p902_p6, %p330_p7 }
  0x23   : > { %s337_s17 = sand.u32 (!%p331_p8), 1, %s995_s24   ;;  %s904_s18 = sshll.u32 (!%p331_p8), %s1003_s26, 2 }
  0x24   : > { %334 = sbr.rel (%p331_p8) target bundleno = 625 (0x271), region = 67  ;;  %s903_s19 = sshll.u32 (!%p331_p8), %s337_s17, 7 }
  0x25   : > { %p390_p9 = scmp.lt.s32.totalorder (!%p331_p8), %s904_s18, 15  ;;  %s905_s20 = sshll.u32 (!%p331_p8), %s1003_s26, 6 }
  0x26   : > { %p395_p10 = scmp.lt.s32.totalorder (!%p331_p8), %s905_s20, 255  ;;  %s1132_s24 = scalar_lea.vmem (!%p331_p8), [#allocation3], %s903_s19 }
  0x27   : > { %p907_p11 = scmp.ne.s32.totalorder (!%p331_p8), %s1003_s26, 0 }
  0x29   : > { %s1294_s18 = smov (!%p390_p9, %s904_s18), 15  ;;  %s1296_s20 = smov (!%p395_p10, %s905_s20), 255 }
  0x2a   : > { %s392_s23 = scalar_lea.vmem %s1281_s2, %s1294_s18  ;;  %s906_s30 = sshll.u32 %s1296_s20, 3 }
  0x2b   : > { %s1130_s11 = scalar_lea.vmem %s1282_s3, %s906_s30  ;;  %409 = sbr.rel (%p907_p11) target bundleno = 51 (0x33), region = 75 }
  0x30   : > { %vm410_vm0 = vcmask 261120   ;;  %v1013_v16 = vmov 0.0  }
  0x31   : > { %411 = vst.msk [vmem:[#allocation2] sm:$0xff] %vm410_vm0, %v1013_v16 }
  0x32   : > { %412 = vst.msk [vmem:[#allocation2 + $0x8] sm:$0xff] %vm410_vm0, %v1013_v16 }
  0x33 PF: > { %v429_v17 = vld [vmem:[%s1132_s24 + $0x70] sm:$0xff]  ;;  %v430_v19 = vld [vmem:[%s1132_s24 + $0x78] sm:$0xff]  ;;  %v427_v23 = vld [vmem:[%s1132_s24 + $0x60] sm:$0xff]  ;;  %vm441_vm1 = vcmask 261120   ;;  %p916_p12 = scmp.ne.s32.totalorder %s1003_s26, 3 }
  0x34   : > { %v425_v18 = vld [vmem:[%s1132_s24 + $0x50] sm:$0xff]  ;;  %506 = vmatpush.msra.mxu2 %v429_v17  ;;  %529 = vmatpush.msra.mxu3 %v430_v19  ;;  %v426_v20 = vld [vmem:[%s1132_s24 + $0x58] sm:$0xff]  ;;  %v428_v24 = vld [vmem:[%s1132_s24 + $0x68] sm:$0xff] }
  0x35   : > { %v421_v21 = vld [vmem:[%s1132_s24 + $0x30] sm:$0xff]  ;;  %v422_v22 = vld [vmem:[%s1132_s24 + $0x38] sm:$0xff]  ;;  %v423_v25 = vld [vmem:[%s1132_s24 + $0x40] sm:$0xff]  ;;  %460 = vmatpush.msra.mxu0 %v427_v23  ;;  %483 = vmatpush.msra.mxu1 %v428_v24 }
  0x36   : > { %507 = vmatpush.msra.mxu2 %v425_v18  ;;  %530 = vmatpush.msra.mxu3 %v426_v20  ;;  %v417_v26 = vld [vmem:[%s1132_s24 + $0x10] sm:$0xff]  ;;  %v418_v27 = vld [vmem:[%s1132_s24 + $0x18] sm:$0xff]  ;;  %v424_v28 = vld [vmem:[%s1132_s24 + $0x48] sm:$0xff] }
  0x37   : > { %v413_v29 = vld [vmem:[%s1279_s0] sm:$0xff]  ;;  %461 = vmatpush.msra.mxu0 %v423_v25  ;;  %484 = vmatpush.msra.mxu1 %v424_v28  ;;  %v419_v30 = vld [vmem:[%s1132_s24 + $0x20] sm:$0xff]  ;;  %v420_v31 = vld [vmem:[%s1132_s24 + $0x28] sm:$0xff] }
  0x38   : > { %508 = vmatpush.msra.mxu2 %v421_v21  ;;  %531 = vmatpush.msra.mxu3 %v422_v22  ;;  %v597_v32 = vld [vmem:[%s1130_s11 + $0x178] sm:$0xff]  ;;  %v415_v34 = vld [vmem:[%s1132_s24] sm:$0xff]  ;;  %v595_v40 = vld [vmem:[%s1130_s11 + $0x168] sm:$0xff] }
  0x39   : > { %v613_v33 = vld [vmem:[%s1130_s11 + $0x1f8] sm:$0xff]  ;;  %462 = vmatpush.msra.mxu0 %v419_v30  ;;  %485 = vmatpush.msra.mxu1 %v420_v31  ;;  %v596_v36 = vld [vmem:[%s1130_s11 + $0x170] sm:$0xff]  ;;  %v414_v42 = vld [vmem:[%s1279_s0 + $0x8] sm:$0xff] }
  0x3a   : > { %509 = vmatpush.msra.mxu2 %v417_v26  ;;  %532 = vmatpush.msra.mxu3 %v418_v27  ;;  %v416_v35 = vld [vmem:[%s1132_s24 + $0x8] sm:$0xff]  ;;  %v612_v39 = vld [vmem:[%s1130_s11 + $0x1f0] sm:$0xff]  ;;  %v594_v44 = vld [vmem:[%s1130_s11 + $0x160] sm:$0xff] }
  0x3b   : > { %912 = vmatmul.msk.f32.vlgmr.msra.gmra.mxu2 %vm441_vm1, %v413_v29  ;;  %914 = vmatmul.msk.f32.vlgmr.msra.gmra.mxu3 %vm441_vm1, %v413_v29  ;;  %v565_v37 = vld [vmem:[%s1130_s11 + $0x78] sm:$0xff]  ;;  %v564_v41 = vld [vmem:[%s1130_s11 + $0x70] sm:$0xff]  ;;  %v611_v45 = vld [vmem:[%s1130_s11 + $0x1e8] sm:$0xff] }
  0x3c   : > { %660 = vmatpush.msrb.mxu2 %v597_v32  ;;  %683 = vmatpush.msrb.mxu3 %v613_v33  ;;  %v581_v38 = vld [vmem:[%s1130_s11 + $0xf8] sm:$0xff]  ;;  %v580_v43 = vld [vmem:[%s1130_s11 + $0xf0] sm:$0xff]  ;;  %v563_v46 = vld [vmem:[%s1130_s11 + $0x68] sm:$0xff] }
  0x3d   : > { %463 = vmatpush.msra.mxu0 %v415_v34  ;;  %486 = vmatpush.msra.mxu1 %v416_v35  ;;  %v579_v47 = vld [vmem:[%s1130_s11 + $0xe8] sm:$0xff]  ;;  %v593_v48 = vld [vmem:[%s1130_s11 + $0x158] sm:$0xff]  ;;  %v610_v49 = vld [vmem:[%s1130_s11 + $0x1e0] sm:$0xff] }
  0x3e   : > { %908 = vmatmul.msk.f32.vlgmr.msra.gmra.mxu0 %vm441_vm1, %v413_v29  ;;  %910 = vmatmul.msk.f32.vlgmr.msra.gmra.mxu1 %vm441_vm1, %v413_v29  ;;  %v562_v50 = vld [vmem:[%s1130_s11 + $0x60] sm:$0xff]  ;;  %v592_v52 = vld [vmem:[%s1130_s11 + $0x150] sm:$0xff]  ;;  %v609_v53 = vld [vmem:[%s1130_s11 + $0x1d8] sm:$0xff] }
  0x3f   : > { %661 = vmatpush.msrb.mxu2 %v596_v36  ;;  %614 = vmatpush.msrb.mxu0 %v565_v37  ;;  %v578_v51 = vld [vmem:[%s1130_s11 + $0xe0] sm:$0xff]  ;;  %v561_v54 = vld [vmem:[%s1130_s11 + $0x58] sm:$0xff]  ;;  %v591_v56 = vld [vmem:[%s1130_s11 + $0x148] sm:$0xff] }
  0x40   : > { %637 = vmatpush.msrb.mxu1 %v581_v38  ;;  %684 = vmatpush.msrb.mxu3 %v612_v39  ;;  %v577_v55 = vld [vmem:[%s1130_s11 + $0xd8] sm:$0xff]  ;;  %v608_v57 = vld [vmem:[%s1130_s11 + $0x1d0] sm:$0xff]  ;;  %v590_v60 = vld [vmem:[%s1130_s11 + $0x140] sm:$0xff] }
  0x41   : > { %662 = vmatpush.msrb.mxu2 %v595_v40  ;;  %615 = vmatpush.msrb.mxu0 %v564_v41  ;;  %v560_v58 = vld [vmem:[%s1130_s11 + $0x50] sm:$0xff]  ;;  %v607_v61 = vld [vmem:[%s1130_s11 + $0x1c8] sm:$0xff]  ;;  %v589_v0 = vld [vmem:[%s1130_s11 + $0x138] sm:$0xff] }
  0x42   : > { %638 = vmatpush.msrb.mxu1 %v580_v43  ;;  %685 = vmatpush.msrb.mxu3 %v611_v45  ;;  %v576_v59 = vld [vmem:[%s1130_s11 + $0xd0] sm:$0xff]  ;;  %v559_v62 = vld [vmem:[%s1130_s11 + $0x48] sm:$0xff]  ;;  %v606_v1 = vld [vmem:[%s1130_s11 + $0x1c0] sm:$0xff] }
  0x43   : > { %913 = vmatmul.msk.f32.gmra.mxu2 %vm441_vm1, %v414_v42  ;;  %915 = vmatmul.msk.f32.gmra.mxu3 %vm441_vm1, %v414_v42  ;;  %v575_v63 = vld [vmem:[%s1130_s11 + $0xc8] sm:$0xff]  ;;  %v558_v2 = vld [vmem:[%s1130_s11 + $0x40] sm:$0xff]  ;;  %v588_v4 = vld [vmem:[%s1130_s11 + $0x130] sm:$0xff] }
  0x44   : > { %663 = vmatpush.msrb.mxu2 %v594_v44  ;;  %616 = vmatpush.msrb.mxu0 %v563_v46  ;;  %v574_v3 = vld [vmem:[%s1130_s11 + $0xc0] sm:$0xff]  ;;  %v605_v5 = vld [vmem:[%s1130_s11 + $0x1b8] sm:$0xff]  ;;  %v587_v8 = vld [vmem:[%s1130_s11 + $0x128] sm:$0xff] }
  0x45   : > { %639 = vmatpush.msrb.mxu1 %v579_v47  ;;  %686 = vmatpush.msrb.mxu3 %v610_v49  ;;  %v557_v6 = vld [vmem:[%s1130_s11 + $0x38] sm:$0xff]  ;;  %v604_v9 = vld [vmem:[%s1130_s11 + $0x1b0] sm:$0xff]  ;;  %v586_v12 = vld [vmem:[%s1130_s11 + $0x120] sm:$0xff] }
  0x46   : > { %664 = vmatpush.msrb.mxu2 %v593_v48  ;;  %909 = vmatmul.msk.f32.gmra.mxu0 %vm441_vm1, %v414_v42  ;;  %v573_v7 = vld [vmem:[%s1130_s11 + $0xb8] sm:$0xff]  ;;  %v556_v10 = vld [vmem:[%s1130_s11 + $0x30] sm:$0xff]  ;;  %v603_v13 = vld [vmem:[%s1130_s11 + $0x1a8] sm:$0xff] }
  0x47   : > { %911 = vmatmul.msk.f32.gmra.mxu1 %vm441_vm1, %v414_v42  ;;  %617 = vmatpush.msrb.mxu0 %v562_v50  ;;  %v572_v11 = vld [vmem:[%s1130_s11 + $0xb0] sm:$0xff]  ;;  %v555_v14 = vld [vmem:[%s1130_s11 + $0x28] sm:$0xff]  ;;  %v585_v16 = vld [vmem:[%s1130_s11 + $0x118] sm:$0xff] }
  0x48   : > { %640 = vmatpush.msrb.mxu1 %v578_v51  ;;  %665 = vmatpush.msrb.mxu2 %v592_v52  ;;  %v571_v15 = vld [vmem:[%s1130_s11 + $0xa8] sm:$0xff]  ;;  %v602_v17 = vld [vmem:[%s1130_s11 + $0x1a0] sm:$0xff]  ;;  %v584_v20 = vld [vmem:[%s1130_s11 + $0x110] sm:$0xff] }
  0x49   : > { %687 = vmatpush.msrb.mxu3 %v609_v53  ;;  %618 = vmatpush.msrb.mxu0 %v561_v54  ;;  %v554_v18 = vld [vmem:[%s1130_s11 + $0x20] sm:$0xff]  ;;  %v601_v21 = vld [vmem:[%s1130_s11 + $0x198] sm:$0xff]  ;;  %v583_v24 = vld [vmem:[%s1130_s11 + $0x108] sm:$0xff] }
  0x4a   : > { %641 = vmatpush.msrb.mxu1 %v577_v55  ;;  %666 = vmatpush.msrb.mxu2 %v591_v56  ;;  %v570_v19 = vld [vmem:[%s1130_s11 + $0xa0] sm:$0xff]  ;;  %v553_v22 = vld [vmem:[%s1130_s11 + $0x18] sm:$0xff]  ;;  %v600_v25 = vld [vmem:[%s1130_s11 + $0x190] sm:$0xff] }
  0x4b   : > { %688 = vmatpush.msrb.mxu3 %v608_v57  ;;  %619 = vmatpush.msrb.mxu0 %v560_v58  ;;  %v569_v23 = vld [vmem:[%s1130_s11 + $0x98] sm:$0xff]  ;;  %v552_v26 = vld [vmem:[%s1130_s11 + $0x10] sm:$0xff]  ;;  %v582_v28 = vld [vmem:[%s1130_s11 + $0x100] sm:$0xff] }
  0x4c   : > { %642 = vmatpush.msrb.mxu1 %v576_v59  ;;  %667 = vmatpush.msrb.mxu2 %v590_v60  ;;  %v568_v27 = vld [vmem:[%s1130_s11 + $0x90] sm:$0xff]  ;;  %v599_v29 = vld [vmem:[%s1130_s11 + $0x188] sm:$0xff]  ;;  %v598_v32 = vld [vmem:[%s1130_s11 + $0x180] sm:$0xff] }
  0x4d   : > { %689 = vmatpush.msrb.mxu3 %v607_v61  ;;  %620 = vmatpush.msrb.mxu0 %v559_v62  ;;  %v551_v30 = vld [vmem:[%s1130_s11 + $0x8] sm:$0xff]  ;;  %v550_v33 = vld [vmem:[%s1130_s11] sm:$0xff] }
  0x4e   : > { %643 = vmatpush.msrb.mxu1 %v575_v63  ;;  %668 = vmatpush.msrb.mxu2 %v589_v0  ;;  %v567_v31 = vld [vmem:[%s1130_s11 + $0x88] sm:$0xff]  ;;  %v566_v34 = vld [vmem:[%s1130_s11 + $0x80] sm:$0xff] }
  0x4f   : > { %690 = vmatpush.msrb.mxu3 %v606_v1  ;;  %621 = vmatpush.msrb.mxu0 %v558_v2  ;;  %v431_v35 = vld [vmem:[%s392_s23] sm:$0xf] }
  0x50   : > { %644 = vmatpush.msrb.mxu1 %v574_v3  ;;  %669 = vmatpush.msrb.mxu2 %v588_v4  ;;  %v433_v36 = vperm.slane %v431_v35, 0  ;;  %v434_v37 = vperm.slane %v431_v35, 1  ;;  %v435_v38 = vperm.slane %v431_v35, 2  ;;  %v436_v39 = vperm.slane %v431_v35, 3 }
  0x51   : > { %691 = vmatpush.msrb.mxu3 %v605_v5  ;;  %622 = vmatpush.msrb.mxu0 %v557_v6  ;;  %v548_v6 = vld [vmem:[#allocation2] sm:$0xff] }
  0x52   : > { %645 = vmatpush.msrb.mxu1 %v573_v7  ;;  %670 = vmatpush.msrb.mxu2 %v587_v8 }
  0x53   : > { %692 = vmatpush.msrb.mxu3 %v604_v9  ;;  %623 = vmatpush.msrb.mxu0 %v556_v10 }
  0x54   : > { %646 = vmatpush.msrb.mxu1 %v572_v11  ;;  %671 = vmatpush.msrb.mxu2 %v586_v12 }
  0x55   : > { %693 = vmatpush.msrb.mxu3 %v603_v13  ;;  %624 = vmatpush.msrb.mxu0 %v555_v14 }
  0x56   : > { %647 = vmatpush.msrb.mxu1 %v571_v15  ;;  %672 = vmatpush.msrb.mxu2 %v585_v16  ;;  %v549_v15 = vld [vmem:[#allocation2 + $0x8] sm:$0xff] }
  0x57   : > { %694 = vmatpush.msrb.mxu3 %v602_v17  ;;  %625 = vmatpush.msrb.mxu0 %v554_v18 }
  0x58   : > { %648 = vmatpush.msrb.mxu1 %v570_v19  ;;  %673 = vmatpush.msrb.mxu2 %v584_v20 }
  0x59   : > { %695 = vmatpush.msrb.mxu3 %v601_v21  ;;  %626 = vmatpush.msrb.mxu0 %v553_v22 }
  0x5a   : > { %649 = vmatpush.msrb.mxu1 %v569_v23  ;;  %674 = vmatpush.msrb.mxu2 %v583_v24 }
  0x5b   : > { %696 = vmatpush.msrb.mxu3 %v600_v25  ;;  %627 = vmatpush.msrb.mxu0 %v552_v26 }
  0x5c   : > { %650 = vmatpush.msrb.mxu1 %v568_v27  ;;  %675 = vmatpush.msrb.mxu2 %v582_v28 }
  0x5d   : > { %697 = vmatpush.msrb.mxu3 %v599_v29  ;;  %628 = vmatpush.msrb.mxu0 %v551_v30 }
  0x5e   : > { %651 = vmatpush.msrb.mxu1 %v567_v31 }
  0x5f   : > { %698 = vmatpush.msrb.mxu3 %v598_v32  ;;  %629 = vmatpush.msrb.mxu0 %v550_v33 }
  0x60   : > { %652 = vmatpush.msrb.mxu1 %v566_v34 }
  0xbb   : > { %v465_v40 = vpop.f32.mrf.mxu0  ;;  %v488_v41 = vpop.f32.mrf.mxu1 }
  0xbc   : > { %v466_v42 = vadd.f32 %v465_v40, %v433_v36  ;;  %v489_v43 = vadd.f32 %v488_v41, %v434_v37 }
  0xbe   : > { %v511_v44 = vpop.f32.mrf.mxu2  ;;  %v534_v45 = vpop.f32.mrf.mxu3  ;;  %v540_v48 = vmax.f32 %v466_v42, 0.0  ;;  %v541_v49 = vmax.f32 %v489_v43, 0.0 }
  0xbf   : > { %v512_v46 = vadd.f32 %v511_v44, %v435_v38  ;;  %v535_v47 = vadd.f32 %v534_v45, %v436_v39 }
  0xc0   : > { %630 = vmatmul.f32.vlgmr.msrb.gmra.mxu0 %v540_v48  ;;  %653 = vmatmul.f32.vlgmr.msrb.gmra.mxu1 %v541_v49 }
  0xc1   : > { %v542_v50 = vmax.f32 %v512_v46, 0.0  ;;  %v543_v51 = vmax.f32 %v535_v47, 0.0 }
  0xc3   : > { %676 = vmatmul.f32.vlgmr.msrb.gmra.mxu2 %v542_v50  ;;  %699 = vmatmul.f32.vlgmr.msrb.gmra.mxu3 %v543_v51  ;;  %v468_v52 = vpop.f32.mrf.mxu0 }
  0xc4   : > { %v491_v53 = vpop.f32.mrf.mxu1  ;;  %v469_v54 = vadd.f32 %v468_v52, %v433_v36 }
  0xc5   : > { %v492_v55 = vadd.f32 %v491_v53, %v434_v37 }
  0xc6   : > { %v514_v56 = vpop.f32.mrf.mxu2  ;;  %v537_v57 = vpop.f32.mrf.mxu3  ;;  %v544_v60 = vmax.f32 %v469_v54, 0.0 }
  0xc7   : > { %v515_v58 = vadd.f32 %v514_v56, %v435_v38  ;;  %v538_v59 = vadd.f32 %v537_v57, %v436_v39  ;;  %v545_v61 = vmax.f32 %v492_v55, 0.0 }
  0xc8   : > { %633 = vmatmul.f32.gmra.mxu0 %v544_v60 }
  0xc9   : > { %v546_v62 = vmax.f32 %v515_v58, 0.0  ;;  %v547_v63 = vmax.f32 %v538_v59, 0.0  ;;  %656 = vmatmul.f32.gmra.mxu1 %v545_v61 }
  0xcb   : > { %679 = vmatmul.f32.gmra.mxu2 %v546_v62  ;;  %702 = vmatmul.f32.gmra.mxu3 %v547_v63 }
 0x13d   : > { %v631_v0 = vpop.f32.mrf.mxu0  ;;  %v654_v1 = vpop.f32.mrf.mxu1 }
 0x13e   : > { %v655_v2 = vadd.f32 %v654_v1, %v631_v0 }
 0x145   : > { %v634_v7 = vpop.f32.mrf.mxu0 }
 0x146   : > { %v677_v3 = vpop.f32.mrf.mxu2  ;;  %v700_v4 = vpop.f32.mrf.mxu3 }
 0x147   : > { %v678_v5 = vadd.f32 %v677_v3, %v655_v2  ;;  %v657_v8 = vpop.f32.mrf.mxu1 }
 0x148   : > { %v658_v11 = vadd.f32 %v657_v8, %v634_v7 }
 0x149   : > { %v701_v9 = vadd.f32 %v700_v4, %v678_v5 }
 0x14b   : > { %v706_v10 = vadd.f32 %v701_v9, %v548_v6 }
 0x14d   : > { %708 = vst.msk [vmem:[#allocation2] sm:$0xff] %vm441_vm1, %v706_v10 }
 0x14e   : > { %v680_v12 = vpop.f32.mrf.mxu2  ;;  %v703_v13 = vpop.f32.mrf.mxu3 }
 0x14f   : > { %v681_v14 = vadd.f32 %v680_v12, %v658_v11 }
 0x151   : > { %v704_v16 = vadd.f32 %v703_v13, %v681_v14  ;;  %713 = sbr.rel (%p916_p12) target bundleno = 625 (0x271), region = 79 }
 0x153   : > { %v707_v17 = vadd.f32 %v704_v16, %v549_v15 }
 0x155   : > { %709 = vst.msk [vmem:[#allocation2 + $0x8] sm:$0xff] %vm441_vm1, %v707_v17 }
 0x156   : > { %v714_v18 = vld [vmem:[%s1279_s0] sm:$0xff]  ;;  %v715_v22 = vld [vmem:[%s1279_s0 + $0x8] sm:$0xff]  ;;  %v1014_v29 = vmov 32.0  }
 0x157   : > { %v716_v19 = vld [vmem:[#allocation2] sm:$0xff]  ;;  %967 = vrcp.f32 %v1014_v29 }
 0x158   : > { %v718_v20 = vadd.f32 %v716_v19, %v714_v18  ;;  %v964_v21 = vld [vmem:[%s1283_s4] ss:$0 sm:$0xff] }
 0x159   : > { %v965_v60 = vld [vmem:[%s1284_s5] ss:$0 sm:$0xff] }
 0x15a   : > { %v724_v24 = vadd.f32 %v964_v21, %v718_v20  ;;  %v966_v63 = vld [vmem:[%s1285_s6] ss:$0 sm:$0xff] }
 0x15c   : > { %v717_v23 = vld [vmem:[#allocation2 + $0x8] sm:$0xff]  ;;  %v726_v26 = vsel %vm441_vm1, %v724_v24, 0.0 }
 0x15d   : > { %v719_v25 = vadd.f32 %v717_v23, %v715_v22  ;;  %727 = vadd.xlane.f32.xlu0 %v726_v26  ;;  %v968_v30 = vpop.eup %967 }
 0x15e   : > { %v733_v31 = vmul.f32 32.0, %v968_v30  ;;  %vm737_vm2 = vweird.f32 %v968_v30 }
 0x15f   : > { %v725_v27 = vadd.f32 %v964_v21, %v719_v25 }
 0x160   : > { %v734_v32 = vsub.f32 1.0, %v733_v31 }
 0x161   : > { %v729_v28 = vsel %vm441_vm1, %v725_v27, 0.0 }
 0x162   : > { %v735_v33 = vmul.f32 %v968_v30, %v734_v32 }
 0x164   : > { %v736_v34 = vadd.f32 %v968_v30, %v735_v33 }
 0x165   : > { %730 = vadd.xlane.f32.xlu0 %v729_v28 }
 0x166   : > { %v738_v35 = vsel %vm737_vm2, %v968_v30, %v736_v34 }
 0x1d0   : > { %v728_v36 = vpop.xlane.xlu0 %727 }
 0x1d1   : > { %v739_v37 = vmul.f32 %v738_v35, %v728_v36 }
 0x1d3   : > { %v741_v38 = vsub.f32 %v724_v24, %v739_v37 }
 0x1d5   : > { %v743_v39 = vmul.f32 %v741_v38, %v741_v38 }
 0x1d7   : > { %v745_v40 = vsel %vm441_vm1, %v743_v39, 0.0 }
 0x1d8   : > { %746 = vadd.xlane.f32.xlu1 %v745_v40  ;;  %v731_v41 = vpop.xlane.xlu0 %730 }
 0x1d9   : > { %v740_v42 = vmul.f32 %v738_v35, %v731_v41 }
 0x1db   : > { %v742_v43 = vsub.f32 %v725_v27, %v740_v42 }
 0x1dd   : > { %v744_v44 = vmul.f32 %v742_v43, %v742_v43 }
 0x1df   : > { %v748_v45 = vsel %vm441_vm1, %v744_v44, 0.0 }
 0x1e0   : > { %749 = vadd.xlane.f32.xlu1 %v748_v45 }
 0x24b   : > { %v747_v46 = vpop.xlane.xlu1 %746 }
 0x24c   : > { %v751_v47 = vmul.f32 %v747_v46, %v738_v35 }
 0x24e   : > { %v753_v48 = vadd.f32 1e-05, %v751_v47 }
 0x250   : > { %969 = vrsqrt.f32 %v753_v48  ;;  %vm761_vm4 = vweird.f32 %v753_v48 }
 0x253   : > { %v750_v49 = vpop.xlane.xlu1 %749 }
 0x254   : > { %v752_v50 = vmul.f32 %v750_v49, %v738_v35 }
 0x256   : > { %v970_v51 = vpop.eup %969  ;;  %v754_v52 = vadd.f32 1e-05, %v752_v50 }
 0x257   : > { %v756_v53 = vmul.f32 %v970_v51, %v753_v48  ;;  %vm762_vm3 = vweird.f32 %v970_v51 }
 0x258   : > { %971 = vrsqrt.f32 %v754_v52  ;;  %vm763_vm5 = vmor %vm761_vm4, %vm762_vm3  ;;  %vm771_vm7 = vweird.f32 %v754_v52 }
 0x259   : > { %v757_v54 = vmul.f32 %v970_v51, %v756_v53 }
 0x25b   : > { %v758_v55 = vmul.f32 0.5, %v757_v54 }
 0x25d   : > { %v759_v56 = vsub.f32 1.5, %v758_v55 }
 0x25e   : > { %v972_v57 = vpop.eup %971 }
 0x25f   : > { %v760_v58 = vmul.f32 %v970_v51, %v759_v56  ;;  %v766_v59 = vmul.f32 %v972_v57, %v754_v52  ;;  %vm772_vm6 = vweird.f32 %v972_v57 }
 0x260   : > { %vm773_vm8 = vmor %vm771_vm7, %vm772_vm6 }
 0x261   : > { %v764_v61 = vsel %vm763_vm5, %v970_v51, %v760_v58  ;;  %v767_v62 = vmul.f32 %v972_v57, %v766_v59 }
 0x262   : > { %v775_v0 = vmul.f32 %v764_v61, %v741_v38 }
 0x263   : > { %v768_v1 = vmul.f32 0.5, %v767_v62 }
 0x264   : > { %v781_v2 = vmul.f32 %v965_v60, %v775_v0 }
 0x265   : > { %v769_v3 = vsub.f32 1.5, %v768_v1 }
 0x266   : > { %v787_v4 = vadd.f32 %v966_v63, %v781_v2 }
 0x267   : > { %v770_v5 = vmul.f32 %v972_v57, %v769_v3 }
 0x268   : > { %789 = vst.msk [vmem:[%s1286_s7] sm:$0xff] %vm441_vm1, %v787_v4 }
 0x269   : > { %v774_v6 = vsel %vm773_vm8, %v972_v57, %v770_v5 }
 0x26a   : > { %v776_v7 = vmul.f32 %v774_v6, %v742_v43 }
 0x26c   : > { %v782_v8 = vmul.f32 %v965_v60, %v776_v7 }
 0x26e   : > { %v788_v9 = vadd.f32 %v966_v63, %v782_v8 }
 0x270   : > { %790 = vst.msk [vmem:[%s1286_s7 + $0x8] sm:$0xff] %vm441_vm1, %v788_v9 }
 0x271 PF: > { %s17_s28 = sadd.s32 1, %s1011_s28   ;;  %s1287_s24 = smov %s999_s25 }
 0x272   : > { %p14_p13 = scmp.ge.s32.totalorder %s17_s28, 6   ;;  %s1288_s25 = smov %s1090_s9 }
 0x273   : > { %s1289_s26 = smov %s1007_s27  ;;  %s1290_s27 = smov %s1292_s29 }
 0x274   :  { %16 = sbr.rel (!%p14_p13) target bundleno = 3 (0x3), region = 123 }

// kernel: _lambda_.35
= control target key start
LH: loop header
LB: loop body
LE: loop exit
PB: predicated region body
PF: predicated region fallthrough
CT: control target
= control target key end

     0   :  { %vm16_vm0 = vcmask 261120   ;;  %v95_v4 = vmov 32.0   ;;  %s140_s0 = inlined_call_operand.vmem [shape: f32[16,32], index: 0, kind: input, shape index: {}]   ;;  %s141_s1 = inlined_call_operand.vmem [shape: f32[1,32], index: 1, kind: input, shape index: {}]   ;;  %s142_s2 = inlined_call_operand.vmem [shape: f32[1,32], index: 2, kind: input, shape index: {}]   ;;  %s143_s3 = inlined_call_operand.vmem [shape: f32[16,32], index: 3, kind: output, shape index: {}]  }
   0x1   :  { %v14_v0 = vld [vmem:[%s140_s0] sm:$0xff]  ;;  %v15_v2 = vld [vmem:[%s140_s0 + $0x8] sm:$0xff]  ;;  %89 = vrcp.f32 %v95_v4 }
   0x2   :  { %v17_v1 = vsel %vm16_vm0, %v14_v0, 0.0  ;;  %v20_v3 = vsel %vm16_vm0, %v15_v2, 0.0  ;;  %v87_v35 = vld [vmem:[%s141_s1] ss:$0 sm:$0xff] }
   0x3   :  { %18 = vadd.xlane.f32.xlu0 %v17_v1  ;;  %v88_v38 = vld [vmem:[%s142_s2] ss:$0 sm:$0xff] }
   0x7   :  { %v90_v5 = vpop.eup %89 }
   0x8   :  { %v24_v6 = vmul.f32 32.0, %v90_v5  ;;  %vm28_vm1 = vweird.f32 %v90_v5 }
   0xa   :  { %v25_v7 = vsub.f32 1.0, %v24_v6 }
   0xb   :  { %21 = vadd.xlane.f32.xlu0 %v20_v3 }
   0xc   :  { %v26_v8 = vmul.f32 %v90_v5, %v25_v7 }
   0xe   :  { %v27_v9 = vadd.f32 %v90_v5, %v26_v8 }
  0x10   :  { %v29_v10 = vsel %vm28_vm1, %v90_v5, %v27_v9 }
  0x76   :  { %v19_v11 = vpop.xlane.xlu0 %18 }
  0x77   :  { %v30_v12 = vmul.f32 %v29_v10, %v19_v11 }
  0x79   :  { %v32_v13 = vsub.f32 %v14_v0, %v30_v12 }
  0x7b   :  { %v34_v14 = vmul.f32 %v32_v13, %v32_v13 }
  0x7d   :  { %v36_v15 = vsel %vm16_vm0, %v34_v14, 0.0 }
  0x7e   :  { %37 = vadd.xlane.f32.xlu1 %v36_v15  ;;  %v22_v16 = vpop.xlane.xlu0 %21 }
  0x7f   :  { %v31_v17 = vmul.f32 %v29_v10, %v22_v16 }
  0x81   :  { %v33_v18 = vsub.f32 %v15_v2, %v31_v17 }
  0x83   :  { %v35_v19 = vmul.f32 %v33_v18, %v33_v18 }
  0x85   :  { %v39_v20 = vsel %vm16_vm0, %v35_v19, 0.0 }
  0x86   :  { %40 = vadd.xlane.f32.xlu1 %v39_v20 }
  0xf1   :  { %v38_v21 = vpop.xlane.xlu1 %37 }
  0xf2   :  { %v42_v22 = vmul.f32 %v38_v21, %v29_v10 }
  0xf4   :  { %v44_v23 = vadd.f32 1e-05, %v42_v22 }
  0xf6   :  { %91 = vrsqrt.f32 %v44_v23  ;;  %vm52_vm3 = vweird.f32 %v44_v23 }
  0xf9   :  { %v41_v24 = vpop.xlane.xlu1 %40 }
  0xfa   :  { %v43_v25 = vmul.f32 %v41_v24, %v29_v10 }
  0xfc   :  { %v92_v26 = vpop.eup %91  ;;  %v45_v27 = vadd.f32 1e-05, %v43_v25 }
  0xfd   :  { %v47_v28 = vmul.f32 %v92_v26, %v44_v23  ;;  %vm53_vm2 = vweird.f32 %v92_v26 }
  0xfe   :  { %93 = vrsqrt.f32 %v45_v27  ;;  %vm54_vm4 = vmor %vm52_vm3, %vm53_vm2  ;;  %vm62_vm6 = vweird.f32 %v45_v27 }
  0xff   :  { %v48_v29 = vmul.f32 %v92_v26, %v47_v28 }
 0x101   :  { %v49_v30 = vmul.f32 0.5, %v48_v29 }
 0x103   :  { %v50_v31 = vsub.f32 1.5, %v49_v30 }
 0x104   :  { %v94_v32 = vpop.eup %93 }
 0x105   :  { %v51_v33 = vmul.f32 %v92_v26, %v50_v31  ;;  %v57_v34 = vmul.f32 %v94_v32, %v45_v27  ;;  %vm63_vm5 = vweird.f32 %v94_v32 }
 0x106   :  { %vm64_vm7 = vmor %vm62_vm6, %vm63_vm5 }
 0x107   :  { %v55_v36 = vsel %vm54_vm4, %v92_v26, %v51_v33  ;;  %v58_v37 = vmul.f32 %v94_v32, %v57_v34 }
 0x108   :  { %v66_v39 = vmul.f32 %v55_v36, %v32_v13 }
 0x109   :  { %v59_v40 = vmul.f32 0.5, %v58_v37 }
 0x10a   :  { %v72_v41 = vmul.f32 %v87_v35, %v66_v39 }
 0x10b   :  { %v60_v42 = vsub.f32 1.5, %v59_v40 }
 0x10c   :  { %v78_v43 = vadd.f32 %v88_v38, %v72_v41 }
 0x10d   :  { %v61_v44 = vmul.f32 %v94_v32, %v60_v42 }
 0x10e   :  { %80 = vst.msk [vmem:[%s143_s3] sm:$0xff] %vm16_vm0, %v78_v43 }
 0x10f   :  { %v65_v45 = vsel %vm64_vm7, %v94_v32, %v61_v44 }
 0x110   :  { %v67_v46 = vmul.f32 %v65_v45, %v33_v18 }
 0x112   :  { %v73_v47 = vmul.f32 %v87_v35, %v67_v46 }
 0x114   :  { %v79_v48 = vadd.f32 %v88_v38, %v73_v47 }
 0x116   :  { %81 = vst.msk [vmem:[%s143_s3 + $0x8] sm:$0xff] %vm16_vm0, %v79_v48 }

// kernel: _lambda_.41
= control target key start
LH: loop header
LB: loop body
LE: loop exit
PB: predicated region body
PF: predicated region fallthrough
CT: control target
= control target key end

     0   :  { %s594_s9 = smov 0   ;;  %s650_s0 = inlined_call_operand.vmem [shape: f32[2,8,32], index: 0, kind: input, shape index: {}]   ;;  %s651_s1 = inlined_call_operand.vmem [shape: f32[2,8,64], index: 1, kind: input, shape index: {}]   ;;  %s652_s2 = inlined_call_operand.vmem [shape: f32[2,8,32], index: 2, kind: output, shape index: {}]  }
   0x1 LB: > { %s505_s10 = sadd.s32 4294967295, %s567_s9   ;;  %p509_p0 = scmp.ge.s32.totalorder %s567_s9, 1  ;;  %s567_s9 = sphi %s594_s9, %s12_s9  }
   0x2   : > { %p120_p1 = scmp.lt.s32.totalorder %s567_s9, 3 }
   0x4   : > { %p121_p2 = pnand %p509_p0, %p120_p1 }
   0x5   : > { %p144_p3 = scmp.lt.s32.totalorder (!%p121_p2), %s505_s10, 1  ;;  %s569_s18 = smov (!%p121_p2), 112  }
   0x6   : > { %124 = sbr.rel (%p121_p2) target bundleno = 812 (0x32c), region = 28  ;;  %s570_s19 = smov (!%p121_p2), 120  }
   0x7   : > { %s571_s20 = smov (!%p121_p2), 104   ;;  %s572_s21 = smov (!%p121_p2), 96  }
   0x8   : > { %s573_s22 = smov (!%p121_p2), 72   ;;  %s574_s23 = smov (!%p121_p2), 88  }
   0x9   : > { %s575_s24 = smov (!%p121_p2), 80   ;;  %s576_s25 = smov (!%p121_p2), 24  }
   0xa   : > { %s577_s29 = smov (!%p121_p2), 8   ;;  %s578_s30 = smov (!%p121_p2), 16  }
   0xb   : > { %s654_s10 = smov (!%p144_p3, %s505_s10), 1  ;;  %vm158_vm0 = vcmask 64512   ;;  %vm294_vm1 = vcmask 130112   ;;  %vm366_vm2 = vcmask 195712   ;;  %vm438_vm3 = vcmask 261312  }
   0xc   : > { %s602_s11 = sshll.u32 %s654_s10, 3 }
   0xd   : > { %s151_s14 = scalar_lea.vmem %s651_s1, %s602_s11  ;;  %s147_s17 = scalar_lea.vmem %s650_s0, %s602_s11 }
   0xe   : > { %v612_v0 = vld [vmem:[%s151_s14] sm:$0xff]  ;;  %s155_s28 = scalar_lea.vmem %s652_s2, %s602_s11 }
   0xf   : > { %513 = vmatpush.xpose.msk.msra.mxu0 %vm158_vm0, %v612_v0  ;;  %v156_v1 = vld [vmem:[%s147_s17] sm:$0xff]  ;;  %298 = vrot.lane.b32.xlu2 %v612_v0, %s569_s18 }
  0x10   : > { %224 = vrot.lane.b32.xlu1 %v156_v1, %s570_s19 }
  0x12   : > { %514 = vmatmul.msk.f32.vlgmr.msra.gmra.mxu0 %vm158_vm0, %v156_v1 }
  0x17   : > { %370 = vrot.lane.b32.xlu2 %v612_v0, %s571_s20 }
  0x18   : > { %195 = vrot.lane.b32.xlu1 %v612_v0, %s572_s21 }
  0x1f   : > { %368 = vrot.lane.b32.xlu2 %v156_v1, %s571_s20 }
  0x20   : > { %296 = vrot.lane.b32.xlu1 %v156_v1, %s569_s18 }
  0x69   : > { %v299_v2 = vpop.permute.xlu2 %298 }
  0x71   : > { %v371_v4 = vpop.permute.xlu2 %370 }
  0x72   : > { %522 = vmatpush.xpose.msk.msrb.mxu0 %vm158_vm0, %v371_v4 }
  0x79   : > { %v369_v7 = vpop.permute.xlu2 %368 }
  0x7a   : > { %523 = vmatmul.msk.f32.vlgmr.msrb.gmra.mxu0 %vm158_vm0, %v369_v7 }
  0x82   : > { %v225_v8 = vpop.permute.xlu1 %224 }
  0x8a   : > { %v196_v9 = vpop.permute.xlu1 %195 }
  0x8b   : > { %216 = vmatpush.msra.mxu1 %v196_v9 }
  0x8d   : > { %519 = vmatpush.xpose.msk.msrb.mxu1 %vm158_vm0, %v299_v2 }
  0x8f   : > { %v182_v3 = vpop.f32.mrf.mxu0 }
  0x90   : > { %v185_v5 = vmul.f32 0.35355338, %v182_v3 }
  0x92   : > { %v186_v6 = vsel %vm158_vm0, %v185_v5, -inf  ;;  %v297_v16 = vpop.permute.xlu1 %296 }
  0x93   : > { %187 = vmax.xlane.f32.xlu0 %v186_v6 }
  0xa7   : > { %226 = vrot.lane.b32.xlu0 %v612_v0, %s570_s19 }
  0xf7   : > { %v393_v14 = vpop.f32.mrf.mxu0 }
  0xf8   : > { %v396_v15 = vmul.f32 0.35355338, %v393_v14 }
  0xfa   : > { %v397_v17 = vsel %vm158_vm0, %v396_v15, -inf }
  0xfb   : > { %398 = vmax.xlane.f32.xlu0 %v397_v17 }
 0x106   : > { %v188_v10 = vpop.xlane.xlu0 %187 }
 0x107   : > { %v189_v11 = vsub.f32 %v185_v5, %v188_v10 }
 0x109   : > { %v190_v12 = vmul.f32 1.442695, %v189_v11 }
 0x10b   : > { %545 = vpow2.f32 %v190_v12 }
 0x10f   : > { %406 = vrot.lane.b32.xlu0 %v612_v0, %s573_s22 }
 0x111   : > { %v546_v13 = vpop.eup %545 }
 0x112   : > { %515 = vmatmul.msk.f32.vlgmr.msra.gmra.mxu1 %vm158_vm0, %v546_v13  ;;  %v192_v43 = vsel %vm158_vm0, %v546_v13, 0.0 }
 0x119   : > { %v227_v18 = vpop.permute.xlu0 %226 }
 0x11a   : > { %516 = vmatpush.xpose.msk.msra.mxu2 %vm158_vm0, %v227_v18  ;;  %520 = vmatmul.msk.f32.vlgmr.msrb.gmra.mxu1 %vm158_vm0, %v297_v16 }
 0x11d   : > { %517 = vmatmul.msk.f32.vlgmr.msra.gmra.mxu2 %vm158_vm0, %v225_v8 }
 0x16e   : > { %v399_v23 = vpop.xlane.xlu0 %398 }
 0x16f   : > { %v400_v24 = vsub.f32 %v396_v15, %v399_v23 }
 0x171   : > { %v401_v26 = vmul.f32 1.442695, %v400_v24 }
 0x173   : > { %547 = vpow2.f32 %v401_v26 }
 0x179   : > { %v548_v30 = vpop.eup %547 }
 0x17a   : > { %v403_v31 = vsel %vm158_vm0, %v548_v30, 0.0 }
 0x181   : > { %v407_v29 = vpop.permute.xlu0 %406 }
 0x182   : > { %427 = vmatpush.msrb.mxu2 %v407_v29 }
 0x183   : > { %524 = vmatmul.msk.f32.vlgmr.msrb.gmra.mxu2 %vm158_vm0, %v548_v30 }
 0x18f   : > { %v218_v19 = vpop.f32.mrf.mxu1 }
 0x197   : > { %v321_v20 = vpop.f32.mrf.mxu1 }
 0x198   : > { %v324_v21 = vmul.f32 0.35355338, %v321_v20 }
 0x19a   : > { %v325_v22 = vsel %vm158_vm0, %v324_v21, -inf }
 0x19b   : > { %326 = vmax.xlane.f32.xlu2 %v325_v22 }
 0x1a0   : > { %v249_v25 = vpop.f32.mrf.mxu2 }
 0x1a1   : > { %v252_v27 = vmul.f32 0.35355338, %v249_v25 }
 0x1a3   : > { %v253_v28 = vsel %vm158_vm0, %v252_v27, -inf }
 0x1a4   : > { %254 = vmax.xlane.f32.xlu1 %v253_v28 }
 0x1b3   : > { %262 = vrot.lane.b32.xlu2 %v612_v0, %s574_s23 }
 0x1bd   : > { %334 = vrot.lane.b32.xlu1 %v612_v0, %s575_s24 }
 0x1e7   : > { %404 = vadd.xlane.f32.xlu1 %v403_v31 }
 0x206   : > { %v429_v47 = vpop.f32.mrf.mxu2 }
 0x20e   : > { %v327_v32 = vpop.xlane.xlu2 %326 }
 0x20f   : > { %v328_v33 = vsub.f32 %v324_v21, %v327_v32 }
 0x211   : > { %v329_v34 = vmul.f32 1.442695, %v328_v33 }
 0x213   : > { %549 = vpow2.f32 %v329_v34 }
 0x216   : > { %v263_v35 = vpop.permute.xlu2 %262 }
 0x217   : > { %v255_v36 = vpop.xlane.xlu1 %254  ;;  %283 = vmatpush.msra.mxu3 %v263_v35 }
 0x218   : > { %v256_v37 = vsub.f32 %v252_v27, %v255_v36 }
 0x219   : > { %v550_v38 = vpop.eup %549 }
 0x21a   : > { %v257_v39 = vmul.f32 1.442695, %v256_v37  ;;  %v331_v40 = vsel %vm158_vm0, %v550_v38, 0.0 }
 0x21b   : > { %332 = vadd.xlane.f32.xlu0 %v331_v40 }
 0x21c   : > { %551 = vpow2.f32 %v257_v39 }
 0x222   : > { %v552_v41 = vpop.eup %551 }
 0x223   : > { %518 = vmatmul.msk.f32.vlgmr.msra.gmra.mxu3 %vm158_vm0, %v552_v41  ;;  %v259_v42 = vsel %vm158_vm0, %v552_v41, 0.0 }
 0x224   : > { %260 = vadd.xlane.f32.xlu2 %v259_v42 }
 0x22c   : > { %193 = vadd.xlane.f32.xlu2 %v192_v43 }
 0x22f   : > { %v335_v44 = vpop.permute.xlu1 %334 }
 0x230   : > { %355 = vmatpush.msrb.mxu3 %v335_v44 }
 0x231   : > { %521 = vmatmul.msk.f32.vlgmr.msrb.gmra.mxu3 %vm158_vm0, %v550_v38 }
 0x25a   : > { %v405_v45 = vpop.xlane.xlu1 %404 }
 0x25b   : > { %553 = vrcp.f32 %v405_v45 }
 0x261   : > { %v554_v46 = vpop.eup %553 }
 0x262   : > { %v433_v48 = vmul.f32 %v554_v46, %v429_v47 }
 0x264   : > { %435 = vrot.lane.b32.xlu2 %v433_v48, %s576_s25 }
 0x28e   : > { %v333_v56 = vpop.xlane.xlu0 %332 }
 0x297   : > { %v261_v49 = vpop.xlane.xlu2 %260 }
 0x298   : > { %555 = vrcp.f32 %v261_v49 }
 0x29e   : > { %v556_v51 = vpop.eup %555 }
 0x29f   : > { %v194_v50 = vpop.xlane.xlu2 %193 }
 0x2a0   : > { %557 = vrcp.f32 %v194_v50 }
 0x2a1   : > { %559 = vrcp.f32 %v333_v56 }
 0x2a6   : > { %v558_v52 = vpop.eup %557  ;;  %v285_v53 = vpop.f32.mrf.mxu3 }
 0x2a7   : > { %v222_v54 = vmul.f32 %v558_v52, %v218_v19  ;;  %v289_v55 = vmul.f32 %v556_v51, %v285_v53  ;;  %v560_v57 = vpop.eup %559 }
 0x2a9   : > { %291 = vrot.lane.b32.xlu0 %v289_v55, %s577_s29  ;;  %223 = vst.msk [vmem:[%s155_s28] sm:$0xff] %vm158_vm0, %v222_v54 }
 0x2b4   : > { %v357_v58 = vpop.f32.mrf.mxu3 }
 0x2b5   : > { %v361_v59 = vmul.f32 %v560_v57, %v357_v58 }
 0x2b7   : > { %363 = vrot.lane.b32.xlu1 %v361_v59, %s578_s30 }
 0x2be   : > { %v436_v62 = vpop.permute.xlu2 %435 }
 0x31b   : > { %v292_v60 = vpop.permute.xlu0 %291 }
 0x31c   : > { %295 = vst.msk [vmem:[%s155_s28] sm:$0xff] %vm294_vm1, %v292_v60 }
 0x329   : > { %v364_v61 = vpop.permute.xlu1 %363 }
 0x32a   : > { %367 = vst.msk [vmem:[%s155_s28] sm:$0xff] %vm366_vm2, %v364_v61 }
 0x32b   : > { %439 = vst.msk [vmem:[%s155_s28] sm:$0xff] %vm438_vm3, %v436_v62 }
 0x32c PF: > { %s12_s9 = sadd.s32 1, %s567_s9  }
 0x32d   : > { %p9_p4 = scmp.ge.s32.totalorder %s12_s9, 4  }
 0x32f   :  { %11 = sbr.rel (!%p9_p4) target bundleno = 1 (0x1), region = 61 }

</bundles_post_ra>
